<compile_context>
chip_gen: v6e
topology: v6e:2x2x1
jax: 0.10.0
libtpu: 0.0.40
codegen_flags: <defaults>
</compile_context>

<pallas_src>
import functools
import math

import jax
import jax.numpy as jnp
from jax import lax
from jax.experimental import pallas as pl
from jax.experimental.pallas import tpu as pltpu


OUT_DIM = 16      # final projection width of the PyTorch module
LN_EPS = 1e-5     # PyTorch TransformerEncoderLayer default layer_norm_eps
NEG_INF = -1e30


# ----------------------------------------------------------------------------
# Fused forward kernel: one grid step == one batch block through the whole net.
# ----------------------------------------------------------------------------
def _fused_forward_kernel(
    x_ref,          # (NT, Din)            NT = batch_tile * S
    emb_w_ref,      # (Din, E)
    emb_b_ref,      # (1, E)
    wqkvo_ref,      # (L, E, 2E + H*E)     [Wq*1/sqrt(d) | Wk | Wv@Wo per head]
    bqkvo_ref,      # (L, 1, 2E + H*E)     [bq*1/sqrt(d) | bk | 0]
    w1_ref,         # (L, E, F)
    w2_ref,         # (L, F, E)
    bias_ref,       # (L, 7, BW)  rows: b_attn, g1, be1, bb2, g2, be2, bb1 (zero-padded to BW)
    out_w_ref,      # (E, OUT_DIM)
    out_b_ref,      # (1, OUT_DIM)
    o_ref,          # (NT, OUT_DIM)
    *, num_heads, num_layers, embed_dim, ff_dim, seq_len, batch_tile,
):
    E = embed_dim
    F = ff_dim
    H = num_heads
    d = E // H
    S = seq_len
    NT = batch_tile * S
    inv_e = 1.0 / E

    def layer_norm(y, g, b):
        mu = jnp.sum(y, axis=-1, keepdims=True) * inv_e
        yc = y - mu
        var = jnp.sum(yc * yc, axis=-1, keepdims=True) * inv_e
        return yc * lax.rsqrt(var + LN_EPS) * g + b

    # Block-diagonal additive mask: all batch elements in the tile share one
    # score/PV matmul per head; cross-batch scores get -inf -> exp -> 0.
    # Built from iota + compares only (no vector integer division).
    if batch_tile > 1:
        ri = lax.broadcasted_iota(jnp.int32, (NT, NT), 0)
        ci = lax.broadcasted_iota(jnp.int32, (NT, NT), 1)
        same = None
        for b in range(batch_tile):
            rin = (ri >= b * S) & (ri < (b + 1) * S)
            cin = (ci >= b * S) & (ci < (b + 1) * S)
            blk = rin & cin
            same = blk if same is None else (same | blk)
        neg_mask = jnp.where(same, 0.0, NEG_INF)
    else:
        neg_mask = None

    # --- embedding linear over all batch*seq rows at once ---------------------
    h = jnp.dot(x_ref[...], emb_w_ref[...],
                preferred_element_type=jnp.float32) + emb_b_ref[...]

    # --- encoder layers (static unroll; weights indexed on the stacked L axis) -
    for li in range(num_layers):
        bsl = bias_ref[li]                         # (7, BW) resident bias slab
        b_attn = bsl[0:1, :E]
        g1, be1 = bsl[1:2, :E], bsl[2:3, :E]
        bb2 = bsl[3:4, :E]
        g2, be2 = bsl[4:5, :E], bsl[5:6, :E]
        bb1 = bsl[6:7, :F]

        # fused Q(scaled) / K / (Wv@Wo) projection: one (NT,E)@(E,2E+H*E) push
        qkvo = jnp.dot(h, wqkvo_ref[li],
                       preferred_element_type=jnp.float32) + bqkvo_ref[li]

        attn = jnp.zeros((NT, E), jnp.float32)
        for hh in range(H):                        # static unroll over heads
            lo = hh * d
            qh = qkvo[:, lo:lo + d]                # 1/sqrt(d) pre-folded into weights
            kh = qkvo[:, E + lo:E + lo + d]
            # transposed contraction on the MXU (no explicit vxpose of kh)
            s = lax.dot_general(qh, kh, (((1,), (1,)), ((), ())),
                                preferred_element_type=jnp.float32)    # (NT, NT)
            if neg_mask is not None:
                s = s + neg_mask
            s = s - jnp.max(s, axis=-1, keepdims=True)
            p = jnp.exp(s)
            p = p * pl.reciprocal(jnp.sum(p, axis=-1, keepdims=True), approx=True)
            # Wv@Wo already folded -> one PV matmul straight into the E-wide output
            vo = qkvo[:, 2 * E + hh * E:2 * E + (hh + 1) * E]           # (NT, E)
            attn = attn + jnp.dot(p, vo, preferred_element_type=jnp.float32)

        # b_attn = bv@Wo + bo fold relies on softmax rows summing to 1 (exact up
        # to the approx-reciprocal error ~1e-4 rel; well inside test tolerance).
        h1 = layer_norm(h + attn + b_attn, g1, be1)        # residual + norm1 (post-norm)

        # feed-forward (relu)
        f = jnp.dot(h1, w1_ref[li], preferred_element_type=jnp.float32) + bb1
        f = jnp.maximum(f, 0.0)
        f = jnp.dot(f, w2_ref[li], preferred_element_type=jnp.float32) + bb2

        h = layer_norm(h1 + f, g2, be2)                    # residual + norm2

    # --- output linear, written at its native 16-lane width --------------------
    out = jnp.dot(h, out_w_ref[...],
                  preferred_element_type=jnp.float32) + out_b_ref[...]
    o_ref[...] = out.astype(o_ref.dtype)


def attention_encoder_forward(x, prep, num_heads, *, batch_blocks=1):
    """x: (B, S, Din) float32; prep: output of prepare_params().

    batch_blocks: grid steps over the batch.  Keep 1 on single-TensorCore chips
    (v5e/v6e); set 2 on v7x so each TensorCore takes one batch block.
    """
    B, S, Din = x.shape
    E = prep["emb_w"].shape[1]
    L, _, QC = prep["wqkvo"].shape
    F = prep["w1"].shape[2]
    BW = prep["bias"].shape[2]

    assert B % batch_blocks == 0
    bt = B // batch_blocks          # batch elements per grid step
    NT = bt * S                     # rows per grid step
    N = B * S

    x2 = x.reshape(N, Din)          # free reshape: all row-wise matmuls see B*S rows

    kernel = functools.partial(
        _fused_forward_kernel, num_heads=num_heads, num_layers=L, embed_dim=E,
        ff_dim=F, seq_len=S, batch_tile=bt)

    def const(shape):
        return pl.BlockSpec(shape, lambda b, _n=len(shape): (0,) * _n)

    out2 = pl.pallas_call(
        kernel,
        grid=(batch_blocks,),
        out_shape=jax.ShapeDtypeStruct((N, OUT_DIM), jnp.float32),
        in_specs=[
            pl.BlockSpec((NT, Din), lambda b: (b, 0)),    # x rows (per-batch-block tile)
            const((Din, E)), const((1, E)),               # embedding
            const((L, E, QC)), const((L, 1, QC)),         # fused Q/K/(Wv@Wo) + bias
            const((L, E, F)),                             # ffn linear1 weight
            const((L, F, E)),                             # ffn linear2 weight
            const((L, 7, BW)),                            # bias/ln slab
            const((E, OUT_DIM)), const((1, OUT_DIM)),     # output projection
        ],
        out_specs=pl.BlockSpec((NT, OUT_DIM), lambda b: (b, 0)),
        # "parallel" batch-block axis -> split across v7x's two TensorCores when
        # batch_blocks=2; with the default single step it is a no-op.
        # Total resident weights ~90 KB; default scoped VMEM limit is ample.
        compiler_params=pltpu.CompilerParams(dimension_semantics=("parallel",)),
    )(
        x2,
        prep["emb_w"], prep["emb_b"],
        prep["wqkvo"], prep["bqkvo"],
        prep["w1"], prep["w2"], prep["bias"],
        prep["out_w"], prep["out_b"],
    )
    return out2.reshape(B, S, OUT_DIM)


# ----------------------------------------------------------------------------
# Parameter init (deterministic, synthetic) and one-time weight preparation
# ----------------------------------------------------------------------------
def _dense(key, fan_in, fan_out, scale=0.05):
    kw, kb = jax.random.split(key)
    w = jax.random.normal(kw, (fan_in, fan_out), jnp.float32) * scale
    b = jax.random.normal(kb, (1, fan_out), jnp.float32) * scale
    return w, b


def init_params(key, input_dim, embed_dim, num_heads, num_layers, ff_dim):
    assert embed_dim % num_heads == 0
    keys = jax.random.split(key, 2 + num_layers)
    params = {}
    params["emb_w"], params["emb_b"] = _dense(keys[0], input_dim, embed_dim)
    params["out_w"], params["out_b"] = _dense(keys[1], embed_dim, OUT_DIM)
    layers = []
    for li in range(num_layers):
        lk = jax.random.split(keys[2 + li], 6)
        wq, bq = _dense(lk[0], embed_dim, embed_dim)
        wk, bk = _dense(lk[1], embed_dim, embed_dim)
        wv, bv = _dense(lk[2], embed_dim, embed_dim)
        wo, bo = _dense(lk[3], embed_dim, embed_dim)
        w1, bb1 = _dense(lk[4], embed_dim, ff_dim)
        w2, bb2 = _dense(lk[5], ff_dim, embed_dim)
        layers.append(dict(
            wq=wq, bq=bq, wk=wk, bk=bk, wv=wv, bv=bv, wo=wo, bo=bo,
            g1=jnp.ones((1, embed_dim), jnp.float32),
            be1=jnp.zeros((1, embed_dim), jnp.float32),
            w1=w1, bb1=bb1, w2=w2, bb2=bb2,
            g2=jnp.ones((1, embed_dim), jnp.float32),
            be2=jnp.zeros((1, embed_dim), jnp.float32),
        ))
    params["layers"] = layers
    return params


def prepare_params(params, num_heads):
    """One-time transform: fold 1/sqrt(d) into Q, fold Wv@Wo per head and
    bv@Wo+bo into a single attention bias, stack layers, pack bias slabs."""
    E = params["emb_w"].shape[1]
    d = E // num_heads
    scale = 1.0 / math.sqrt(d)
    F = params["layers"][0]["w1"].shape[1]
    BW = max(E, F)

    def pad_row(v):
        return jnp.pad(v, ((0, 0), (0, BW - v.shape[1])))

    wqkvo_l, bqkvo_l, w1_l, w2_l, bias_l = [], [], [], [], []
    for lp in params["layers"]:
        wq, bq = lp["wq"], lp["bq"]
        wk, bk = lp["wk"], lp["bk"]
        wv, bv = lp["wv"], lp["bv"]
        wo, bo = lp["wo"], lp["bo"]
        # per-head fold: Wv_h @ Wo_h -> (E, E); concat over heads -> (E, H*E)
        wvo = jnp.concatenate(
            [wv[:, h * d:(h + 1) * d] @ wo[h * d:(h + 1) * d, :] for h in range(num_heads)],
            axis=1)
        b_attn = bv @ wo + bo                     # == sum_h bv_h @ Wo_h + bo
        wqkvo_l.append(jnp.concatenate([wq * scale, wk, wvo], axis=1))
        bqkvo_l.append(jnp.concatenate(
            [bq * scale, bk, jnp.zeros((1, num_heads * E), jnp.float32)], axis=1))
        w1_l.append(lp["w1"])
        w2_l.append(lp["w2"])
        bias_l.append(jnp.concatenate([
            pad_row(b_attn), pad_row(lp["g1"]), pad_row(lp["be1"]),
            pad_row(lp["bb2"]), pad_row(lp["g2"]), pad_row(lp["be2"]),
            pad_row(lp["bb1"])], axis=0))          # (7, BW)

    return dict(
        emb_w=params["emb_w"], emb_b=params["emb_b"],
        wqkvo=jnp.stack(wqkvo_l), bqkvo=jnp.stack(bqkvo_l),
        w1=jnp.stack(w1_l), w2=jnp.stack(w2_l),
        bias=jnp.stack(bias_l),
        out_w=params["out_w"], out_b=params["out_b"],
    )


# ----------------------------------------------------------------------------
# Pure-JAX reference (uses the raw, un-fused params) for a correctness check
# ----------------------------------------------------------------------------
def reference_forward(x, params, num_heads):
    E = params["emb_w"].shape[1]
    d = E // num_heads
    scale = 1.0 / math.sqrt(d)

    def layer_norm(y, g, b):
        mu = jnp.mean(y, axis=-1, keepdims=True)
        var = jnp.mean((y - mu) ** 2, axis=-1, keepdims=True)
        return (y - mu) / jnp.sqrt(var + LN_EPS) * g + b

    h = x @ params["emb_w"] + params["emb_b"]
    B, S, _ = h.shape
    for lp in params["layers"]:
        q = (h @ lp["wq"] + lp["bq"]).reshape(B, S, num_heads, d).transpose(0, 2, 1, 3)
        k = (h @ lp["wk"] + lp["bk"]).reshape(B, S, num_heads, d).transpose(0, 2, 1, 3)
        v = (h @ lp["wv"] + lp["bv"]).reshape(B, S, num_heads, d).transpose(0, 2, 1, 3)
        s = jnp.einsum("bhqd,bhkd->bhqk", q, k) * scale
        p = jax.nn.softmax(s, axis=-1)
        o = jnp.einsum("bhqk,bhkd->bhqd", p, v).transpose(0, 2, 1, 3).reshape(B, S, E)
        attn = o @ lp["wo"] + lp["bo"]
        h1 = layer_norm(h + attn, lp["g1"], lp["be1"])
        f = jnp.maximum(h1 @ lp["w1"] + lp["bb1"], 0.0)
        f = f @ lp["w2"] + lp["bb2"]
        h = layer_norm(h1 + f, lp["g2"], lp["be2"])
    return h @ params["out_w"] + params["out_b"]


# ----------------------------------------------------------------------------
if __name__ == "__main__":
    input_dim, embed_dim, num_heads, num_layers, ff_dim = 20, 32, 4, 2, 64
    batch, seq = 2, 8

    key = jax.random.PRNGKey(0)
    kx, kp = jax.random.split(key)
    x = jax.random.normal(kx, (batch, seq, input_dim), jnp.float32)
    params = init_params(kp, input_dim, embed_dim, num_heads, num_layers, ff_dim)
    prep = prepare_params(params, num_heads)

    ref = reference_forward(x, params, num_heads)

    # default: single grid step (whole batch fused) -> best on v5e/v6e
    out = attention_encoder_forward(x, prep, num_heads, batch_blocks=1)
    jax.block_until_ready(out)
    assert out.shape == (batch, seq, OUT_DIM)
    assert jnp.allclose(out, ref, atol=2e-2, rtol=2e-2), float(jnp.max(jnp.abs(out - ref)))

    # two parallel batch blocks (one per TensorCore on v7x; serial but correct elsewhere)
    out2 = attention_encoder_forward(x, prep, num_heads, batch_blocks=2)
    jax.block_until_ready(out2)
    assert jnp.allclose(out2, ref, atol=2e-2, rtol=2e-2), float(jnp.max(jnp.abs(out2 - ref)))

    print("KERNEL_OK")
</pallas_src>

<mosaic_0001>
module attributes {stable_mosaic.version = 11 : i64} {
  func.func @_fused_forward_kernel(%arg0: i32, %arg1: memref<16x20xf32, #tpu.memory_space<vmem>>, %arg2: memref<20x32xf32, #tpu.memory_space<vmem>>, %arg3: memref<1x32xf32, #tpu.memory_space<vmem>>, %arg4: memref<2x32x192xf32, #tpu.memory_space<vmem>>, %arg5: memref<2x1x192xf32, #tpu.memory_space<vmem>>, %arg6: memref<2x32x64xf32, #tpu.memory_space<vmem>>, %arg7: memref<2x64x32xf32, #tpu.memory_space<vmem>>, %arg8: memref<2x7x64xf32, #tpu.memory_space<vmem>>, %arg9: memref<32x16xf32, #tpu.memory_space<vmem>>, %arg10: memref<1x16xf32, #tpu.memory_space<vmem>>, %arg11: memref<16x16xf32, #tpu.memory_space<vmem>>) attributes {dimension_semantics = [#tpu.dimension_semantics<parallel>], iteration_bounds = array<i64: 1>, scalar_prefetch = 0 : i64, scratch_operands = 0 : i64, tpu.core_type = #tpu.core_type<tc>, window_params = [{transform_indices = @transform_0, window_bounds = array<i64: 16, 20>}, {pipeline_mode = #tpu.pipeline_mode<synchronous>, transform_indices = @transform_1, window_bounds = array<i64: 20, 32>}, {pipeline_mode = #tpu.pipeline_mode<synchronous>, transform_indices = @transform_2, window_bounds = array<i64: 1, 32>}, {pipeline_mode = #tpu.pipeline_mode<synchronous>, transform_indices = @transform_3, window_bounds = array<i64: 2, 32, 192>}, {pipeline_mode = #tpu.pipeline_mode<synchronous>, transform_indices = @transform_4, window_bounds = array<i64: 2, 1, 192>}, {pipeline_mode = #tpu.pipeline_mode<synchronous>, transform_indices = @transform_5, window_bounds = array<i64: 2, 32, 64>}, {pipeline_mode = #tpu.pipeline_mode<synchronous>, transform_indices = @transform_6, window_bounds = array<i64: 2, 64, 32>}, {pipeline_mode = #tpu.pipeline_mode<synchronous>, transform_indices = @transform_7, window_bounds = array<i64: 2, 7, 64>}, {pipeline_mode = #tpu.pipeline_mode<synchronous>, transform_indices = @transform_8, window_bounds = array<i64: 32, 16>}, {pipeline_mode = #tpu.pipeline_mode<synchronous>, transform_indices = @transform_9, window_bounds = array<i64: 1, 16>}, {transform_indices = @transform_10, window_bounds = array<i64: 16, 16>}]} {
    %0 = tpu.iota {dimensions = array<i32: 0>} : vector<16x16xi32>
    %1 = tpu.iota {dimensions = array<i32: 1>} : vector<16x16xi32>
    %c0_i32 = arith.constant 0 : i32
    %2 = vector.broadcast %c0_i32 : i32 to vector<16x16xi32>
    %3 = arith.cmpi sge, %0, %2 : vector<16x16xi32>
    %c8_i32 = arith.constant 8 : i32
    %4 = vector.broadcast %c8_i32 : i32 to vector<16x16xi32>
    %5 = arith.cmpi slt, %0, %4 : vector<16x16xi32>
    %6 = arith.andi %3, %5 : vector<16x16xi1>
    %c0_i32_0 = arith.constant 0 : i32
    %7 = vector.broadcast %c0_i32_0 : i32 to vector<16x16xi32>
    %8 = arith.cmpi sge, %1, %7 : vector<16x16xi32>
    %c8_i32_1 = arith.constant 8 : i32
    %9 = vector.broadcast %c8_i32_1 : i32 to vector<16x16xi32>
    %10 = arith.cmpi slt, %1, %9 : vector<16x16xi32>
    %11 = arith.andi %8, %10 : vector<16x16xi1>
    %12 = arith.andi %6, %11 : vector<16x16xi1>
    %c8_i32_2 = arith.constant 8 : i32
    %13 = vector.broadcast %c8_i32_2 : i32 to vector<16x16xi32>
    %14 = arith.cmpi sge, %0, %13 : vector<16x16xi32>
    %c16_i32 = arith.constant 16 : i32
    %15 = vector.broadcast %c16_i32 : i32 to vector<16x16xi32>
    %16 = arith.cmpi slt, %0, %15 : vector<16x16xi32>
    %17 = arith.andi %14, %16 : vector<16x16xi1>
    %c8_i32_3 = arith.constant 8 : i32
    %18 = vector.broadcast %c8_i32_3 : i32 to vector<16x16xi32>
    %19 = arith.cmpi sge, %1, %18 : vector<16x16xi32>
    %c16_i32_4 = arith.constant 16 : i32
    %20 = vector.broadcast %c16_i32_4 : i32 to vector<16x16xi32>
    %21 = arith.cmpi slt, %1, %20 : vector<16x16xi32>
    %22 = arith.andi %19, %21 : vector<16x16xi1>
    %23 = arith.andi %17, %22 : vector<16x16xi1>
    %24 = arith.ori %12, %23 : vector<16x16xi1>
    %cst = arith.constant 0.000000e+00 : f32
    %cst_5 = arith.constant -1.000000e+30 : f32
    %25 = vector.broadcast %cst : f32 to vector<16x16xf32>
    %26 = vector.broadcast %cst_5 : f32 to vector<16x16xf32>
    %27 = arith.select %24, %25, %26 : vector<16x16xi1>, vector<16x16xf32>
    %c0 = arith.constant 0 : index
    %c0_6 = arith.constant 0 : index
    %28 = vector.load %arg1[%c0, %c0_6] : memref<16x20xf32, #tpu.memory_space<vmem>>, vector<16x20xf32>
    %c0_7 = arith.constant 0 : index
    %c0_8 = arith.constant 0 : index
    %29 = vector.load %arg2[%c0_7, %c0_8] : memref<20x32xf32, #tpu.memory_space<vmem>>, vector<20x32xf32>
    %cst_9 = arith.constant dense<0.000000e+00> : vector<16x32xf32>
    %30 = tpu.matmul %28, %29, %cst_9 {dimension_numbers = #tpu.dot_dimension_numbers<[1], [0], [0], [1], [0, 0, 1, 1], [], []>} : vector<16x20xf32>, vector<20x32xf32>, vector<16x32xf32> -> vector<16x32xf32>
    %c0_10 = arith.constant 0 : index
    %c0_11 = arith.constant 0 : index
    %31 = vector.load %arg3[%c0_10, %c0_11] : memref<1x32xf32, #tpu.memory_space<vmem>>, vector<1x32xf32>
    %32 = vector.broadcast %31 : vector<1x32xf32> to vector<16x32xf32>
    %33 = arith.addf %30, %32 : vector<16x32xf32>
    %c0_12 = arith.constant 0 : index
    %c0_13 = arith.constant 0 : index
    %c0_14 = arith.constant 0 : index
    %34 = vector.load %arg8[%c0_12, %c0_13, %c0_14] : memref<2x7x64xf32, #tpu.memory_space<vmem>>, vector<1x7x64xf32>
    %35 = vector.shape_cast %34 : vector<1x7x64xf32> to vector<7x64xf32>
    %36 = vector.extract_strided_slice %35 {offsets = [0, 0], sizes = [1, 32], strides = [1, 1]} : vector<7x64xf32> to vector<1x32xf32>
    %37 = vector.extract_strided_slice %35 {offsets = [1, 0], sizes = [1, 32], strides = [1, 1]} : vector<7x64xf32> to vector<1x32xf32>
    %38 = vector.extract_strided_slice %35 {offsets = [2, 0], sizes = [1, 32], strides = [1, 1]} : vector<7x64xf32> to vector<1x32xf32>
    %39 = vector.extract_strided_slice %35 {offsets = [3, 0], sizes = [1, 32], strides = [1, 1]} : vector<7x64xf32> to vector<1x32xf32>
    %40 = vector.extract_strided_slice %35 {offsets = [4, 0], sizes = [1, 32], strides = [1, 1]} : vector<7x64xf32> to vector<1x32xf32>
    %41 = vector.extract_strided_slice %35 {offsets = [5, 0], sizes = [1, 32], strides = [1, 1]} : vector<7x64xf32> to vector<1x32xf32>
    %42 = vector.extract_strided_slice %35 {offsets = [6, 0], sizes = [1, 64], strides = [1, 1]} : vector<7x64xf32> to vector<1x64xf32>
    %c0_15 = arith.constant 0 : index
    %c0_16 = arith.constant 0 : index
    %c0_17 = arith.constant 0 : index
    %43 = vector.load %arg4[%c0_15, %c0_16, %c0_17] : memref<2x32x192xf32, #tpu.memory_space<vmem>>, vector<1x32x192xf32>
    %44 = vector.shape_cast %43 : vector<1x32x192xf32> to vector<32x192xf32>
    %cst_18 = arith.constant dense<0.000000e+00> : vector<16x192xf32>
    %45 = tpu.matmul %33, %44, %cst_18 {dimension_numbers = #tpu.dot_dimension_numbers<[1], [0], [0], [1], [0, 0, 1, 1], [], []>} : vector<16x32xf32>, vector<32x192xf32>, vector<16x192xf32> -> vector<16x192xf32>
    %c0_19 = arith.constant 0 : index
    %c0_20 = arith.constant 0 : index
    %c0_21 = arith.constant 0 : index
    %46 = vector.load %arg5[%c0_19, %c0_20, %c0_21] : memref<2x1x192xf32, #tpu.memory_space<vmem>>, vector<1x1x192xf32>
    %47 = vector.shape_cast %46 : vector<1x1x192xf32> to vector<1x192xf32>
    %48 = vector.broadcast %47 : vector<1x192xf32> to vector<16x192xf32>
    %49 = arith.addf %45, %48 : vector<16x192xf32>
    %cst_22 = arith.constant 0.000000e+00 : f32
    %50 = vector.broadcast %cst_22 : f32 to vector<16x32xf32>
    %51 = vector.extract_strided_slice %49 {offsets = [0, 0], sizes = [16, 8], strides = [1, 1]} : vector<16x192xf32> to vector<16x8xf32>
    %52 = vector.extract_strided_slice %49 {offsets = [0, 32], sizes = [16, 8], strides = [1, 1]} : vector<16x192xf32> to vector<16x8xf32>
    %cst_23 = arith.constant dense<0.000000e+00> : vector<16x16xf32>
    %53 = tpu.matmul %51, %52, %cst_23 {dimension_numbers = #tpu.dot_dimension_numbers<[1], [1], [0], [0], [0, 0, 1, 0], [], []>} : vector<16x8xf32>, vector<16x8xf32>, vector<16x16xf32> -> vector<16x16xf32>
    %54 = arith.addf %53, %27 : vector<16x16xf32>
    %cst_24 = arith.constant dense<0xFF800000> : vector<16xf32>
    %55 = vector.multi_reduction <maximumf>, %54, %cst_24 [1] : vector<16x16xf32> to vector<16xf32>
    %56 = vector.shape_cast %55 : vector<16xf32> to vector<16x1xf32>
    %57 = vector.broadcast %56 : vector<16x1xf32> to vector<16x16xf32>
    %58 = arith.subf %54, %57 : vector<16x16xf32>
    %59 = math.exp %58 : vector<16x16xf32>
    %cst_25 = arith.constant dense<0.000000e+00> : vector<16xf32>
    %60 = vector.multi_reduction <add>, %59, %cst_25 [1] : vector<16x16xf32> to vector<16xf32>
    %61 = vector.shape_cast %60 : vector<16xf32> to vector<16x1xf32>
    %62 = tpu.reciprocal %61 {approx = true} : vector<16x1xf32> -> vector<16x1xf32>
    %63 = vector.broadcast %62 : vector<16x1xf32> to vector<16x16xf32>
    %64 = arith.mulf %59, %63 : vector<16x16xf32>
    %65 = vector.extract_strided_slice %49 {offsets = [0, 64], sizes = [16, 32], strides = [1, 1]} : vector<16x192xf32> to vector<16x32xf32>
    %cst_26 = arith.constant dense<0.000000e+00> : vector<16x32xf32>
    %66 = tpu.matmul %64, %65, %cst_26 {dimension_numbers = #tpu.dot_dimension_numbers<[1], [0], [0], [1], [0, 0, 1, 1], [], []>} : vector<16x16xf32>, vector<16x32xf32>, vector<16x32xf32> -> vector<16x32xf32>
    %67 = arith.addf %50, %66 : vector<16x32xf32>
    %68 = vector.extract_strided_slice %49 {offsets = [0, 8], sizes = [16, 8], strides = [1, 1]} : vector<16x192xf32> to vector<16x8xf32>
    %69 = vector.extract_strided_slice %49 {offsets = [0, 40], sizes = [16, 8], strides = [1, 1]} : vector<16x192xf32> to vector<16x8xf32>
    %cst_27 = arith.constant dense<0.000000e+00> : vector<16x16xf32>
    %70 = tpu.matmul %68, %69, %cst_27 {dimension_numbers = #tpu.dot_dimension_numbers<[1], [1], [0], [0], [0, 0, 1, 0], [], []>} : vector<16x8xf32>, vector<16x8xf32>, vector<16x16xf32> -> vector<16x16xf32>
    %71 = arith.addf %70, %27 : vector<16x16xf32>
    %cst_28 = arith.constant dense<0xFF800000> : vector<16xf32>
    %72 = vector.multi_reduction <maximumf>, %71, %cst_28 [1] : vector<16x16xf32> to vector<16xf32>
    %73 = vector.shape_cast %72 : vector<16xf32> to vector<16x1xf32>
    %74 = vector.broadcast %73 : vector<16x1xf32> to vector<16x16xf32>
    %75 = arith.subf %71, %74 : vector<16x16xf32>
    %76 = math.exp %75 : vector<16x16xf32>
    %cst_29 = arith.constant dense<0.000000e+00> : vector<16xf32>
    %77 = vector.multi_reduction <add>, %76, %cst_29 [1] : vector<16x16xf32> to vector<16xf32>
    %78 = vector.shape_cast %77 : vector<16xf32> to vector<16x1xf32>
    %79 = tpu.reciprocal %78 {approx = true} : vector<16x1xf32> -> vector<16x1xf32>
    %80 = vector.broadcast %79 : vector<16x1xf32> to vector<16x16xf32>
    %81 = arith.mulf %76, %80 : vector<16x16xf32>
    %82 = vector.extract_strided_slice %49 {offsets = [0, 96], sizes = [16, 32], strides = [1, 1]} : vector<16x192xf32> to vector<16x32xf32>
    %cst_30 = arith.constant dense<0.000000e+00> : vector<16x32xf32>
    %83 = tpu.matmul %81, %82, %cst_30 {dimension_numbers = #tpu.dot_dimension_numbers<[1], [0], [0], [1], [0, 0, 1, 1], [], []>} : vector<16x16xf32>, vector<16x32xf32>, vector<16x32xf32> -> vector<16x32xf32>
    %84 = arith.addf %67, %83 : vector<16x32xf32>
    %85 = vector.extract_strided_slice %49 {offsets = [0, 16], sizes = [16, 8], strides = [1, 1]} : vector<16x192xf32> to vector<16x8xf32>
    %86 = vector.extract_strided_slice %49 {offsets = [0, 48], sizes = [16, 8], strides = [1, 1]} : vector<16x192xf32> to vector<16x8xf32>
    %cst_31 = arith.constant dense<0.000000e+00> : vector<16x16xf32>
    %87 = tpu.matmul %85, %86, %cst_31 {dimension_numbers = #tpu.dot_dimension_numbers<[1], [1], [0], [0], [0, 0, 1, 0], [], []>} : vector<16x8xf32>, vector<16x8xf32>, vector<16x16xf32> -> vector<16x16xf32>
    %88 = arith.addf %87, %27 : vector<16x16xf32>
    %cst_32 = arith.constant dense<0xFF800000> : vector<16xf32>
    %89 = vector.multi_reduction <maximumf>, %88, %cst_32 [1] : vector<16x16xf32> to vector<16xf32>
    %90 = vector.shape_cast %89 : vector<16xf32> to vector<16x1xf32>
    %91 = vector.broadcast %90 : vector<16x1xf32> to vector<16x16xf32>
    %92 = arith.subf %88, %91 : vector<16x16xf32>
    %93 = math.exp %92 : vector<16x16xf32>
    %cst_33 = arith.constant dense<0.000000e+00> : vector<16xf32>
    %94 = vector.multi_reduction <add>, %93, %cst_33 [1] : vector<16x16xf32> to vector<16xf32>
    %95 = vector.shape_cast %94 : vector<16xf32> to vector<16x1xf32>
    %96 = tpu.reciprocal %95 {approx = true} : vector<16x1xf32> -> vector<16x1xf32>
    %97 = vector.broadcast %96 : vector<16x1xf32> to vector<16x16xf32>
    %98 = arith.mulf %93, %97 : vector<16x16xf32>
    %99 = vector.extract_strided_slice %49 {offsets = [0, 128], sizes = [16, 32], strides = [1, 1]} : vector<16x192xf32> to vector<16x32xf32>
    %cst_34 = arith.constant dense<0.000000e+00> : vector<16x32xf32>
    %100 = tpu.matmul %98, %99, %cst_34 {dimension_numbers = #tpu.dot_dimension_numbers<[1], [0], [0], [1], [0, 0, 1, 1], [], []>} : vector<16x16xf32>, vector<16x32xf32>, vector<16x32xf32> -> vector<16x32xf32>
    %101 = arith.addf %84, %100 : vector<16x32xf32>
    %102 = vector.extract_strided_slice %49 {offsets = [0, 24], sizes = [16, 8], strides = [1, 1]} : vector<16x192xf32> to vector<16x8xf32>
    %103 = vector.extract_strided_slice %49 {offsets = [0, 56], sizes = [16, 8], strides = [1, 1]} : vector<16x192xf32> to vector<16x8xf32>
    %cst_35 = arith.constant dense<0.000000e+00> : vector<16x16xf32>
    %104 = tpu.matmul %102, %103, %cst_35 {dimension_numbers = #tpu.dot_dimension_numbers<[1], [1], [0], [0], [0, 0, 1, 0], [], []>} : vector<16x8xf32>, vector<16x8xf32>, vector<16x16xf32> -> vector<16x16xf32>
    %105 = arith.addf %104, %27 : vector<16x16xf32>
    %cst_36 = arith.constant dense<0xFF800000> : vector<16xf32>
    %106 = vector.multi_reduction <maximumf>, %105, %cst_36 [1] : vector<16x16xf32> to vector<16xf32>
    %107 = vector.shape_cast %106 : vector<16xf32> to vector<16x1xf32>
    %108 = vector.broadcast %107 : vector<16x1xf32> to vector<16x16xf32>
    %109 = arith.subf %105, %108 : vector<16x16xf32>
    %110 = math.exp %109 : vector<16x16xf32>
    %cst_37 = arith.constant dense<0.000000e+00> : vector<16xf32>
    %111 = vector.multi_reduction <add>, %110, %cst_37 [1] : vector<16x16xf32> to vector<16xf32>
    %112 = vector.shape_cast %111 : vector<16xf32> to vector<16x1xf32>
    %113 = tpu.reciprocal %112 {approx = true} : vector<16x1xf32> -> vector<16x1xf32>
    %114 = vector.broadcast %113 : vector<16x1xf32> to vector<16x16xf32>
    %115 = arith.mulf %110, %114 : vector<16x16xf32>
    %116 = vector.extract_strided_slice %49 {offsets = [0, 160], sizes = [16, 32], strides = [1, 1]} : vector<16x192xf32> to vector<16x32xf32>
    %cst_38 = arith.constant dense<0.000000e+00> : vector<16x32xf32>
    %117 = tpu.matmul %115, %116, %cst_38 {dimension_numbers = #tpu.dot_dimension_numbers<[1], [0], [0], [1], [0, 0, 1, 1], [], []>} : vector<16x16xf32>, vector<16x32xf32>, vector<16x32xf32> -> vector<16x32xf32>
    %118 = arith.addf %101, %117 : vector<16x32xf32>
    %119 = arith.addf %33, %118 : vector<16x32xf32>
    %120 = vector.broadcast %36 : vector<1x32xf32> to vector<16x32xf32>
    %121 = arith.addf %119, %120 : vector<16x32xf32>
    %cst_39 = arith.constant dense<0.000000e+00> : vector<16xf32>
    %122 = vector.multi_reduction <add>, %121, %cst_39 [1] : vector<16x32xf32> to vector<16xf32>
    %123 = vector.shape_cast %122 : vector<16xf32> to vector<16x1xf32>
    %cst_40 = arith.constant 3.125000e-02 : f32
    %124 = vector.broadcast %cst_40 : f32 to vector<16x1xf32>
    %125 = arith.mulf %123, %124 : vector<16x1xf32>
    %126 = vector.broadcast %125 : vector<16x1xf32> to vector<16x32xf32>
    %127 = arith.subf %121, %126 : vector<16x32xf32>
    %128 = arith.mulf %127, %127 : vector<16x32xf32>
    %cst_41 = arith.constant dense<0.000000e+00> : vector<16xf32>
    %129 = vector.multi_reduction <add>, %128, %cst_41 [1] : vector<16x32xf32> to vector<16xf32>
    %130 = vector.shape_cast %129 : vector<16xf32> to vector<16x1xf32>
    %cst_42 = arith.constant 3.125000e-02 : f32
    %131 = vector.broadcast %cst_42 : f32 to vector<16x1xf32>
    %132 = arith.mulf %130, %131 : vector<16x1xf32>
    %cst_43 = arith.constant 9.99999974E-6 : f32
    %133 = vector.broadcast %cst_43 : f32 to vector<16x1xf32>
    %134 = arith.addf %132, %133 : vector<16x1xf32>
    %135 = math.rsqrt %134 : vector<16x1xf32>
    %136 = vector.broadcast %135 : vector<16x1xf32> to vector<16x32xf32>
    %137 = arith.mulf %127, %136 : vector<16x32xf32>
    %138 = vector.broadcast %37 : vector<1x32xf32> to vector<16x32xf32>
    %139 = arith.mulf %137, %138 : vector<16x32xf32>
    %140 = vector.broadcast %38 : vector<1x32xf32> to vector<16x32xf32>
    %141 = arith.addf %139, %140 : vector<16x32xf32>
    %c0_44 = arith.constant 0 : index
    %c0_45 = arith.constant 0 : index
    %c0_46 = arith.constant 0 : index
    %142 = vector.load %arg6[%c0_44, %c0_45, %c0_46] : memref<2x32x64xf32, #tpu.memory_space<vmem>>, vector<1x32x64xf32>
    %143 = vector.shape_cast %142 : vector<1x32x64xf32> to vector<32x64xf32>
    %cst_47 = arith.constant dense<0.000000e+00> : vector<16x64xf32>
    %144 = tpu.matmul %141, %143, %cst_47 {dimension_numbers = #tpu.dot_dimension_numbers<[1], [0], [0], [1], [0, 0, 1, 1], [], []>} : vector<16x32xf32>, vector<32x64xf32>, vector<16x64xf32> -> vector<16x64xf32>
    %145 = vector.broadcast %42 : vector<1x64xf32> to vector<16x64xf32>
    %146 = arith.addf %144, %145 : vector<16x64xf32>
    %cst_48 = arith.constant 0.000000e+00 : f32
    %147 = vector.broadcast %cst_48 : f32 to vector<16x64xf32>
    %148 = arith.maximumf %146, %147 : vector<16x64xf32>
    %c0_49 = arith.constant 0 : index
    %c0_50 = arith.constant 0 : index
    %c0_51 = arith.constant 0 : index
    %149 = vector.load %arg7[%c0_49, %c0_50, %c0_51] : memref<2x64x32xf32, #tpu.memory_space<vmem>>, vector<1x64x32xf32>
    %150 = vector.shape_cast %149 : vector<1x64x32xf32> to vector<64x32xf32>
    %cst_52 = arith.constant dense<0.000000e+00> : vector<16x32xf32>
    %151 = tpu.matmul %148, %150, %cst_52 {dimension_numbers = #tpu.dot_dimension_numbers<[1], [0], [0], [1], [0, 0, 1, 1], [], []>} : vector<16x64xf32>, vector<64x32xf32>, vector<16x32xf32> -> vector<16x32xf32>
    %152 = vector.broadcast %39 : vector<1x32xf32> to vector<16x32xf32>
    %153 = arith.addf %151, %152 : vector<16x32xf32>
    %154 = arith.addf %141, %153 : vector<16x32xf32>
    %cst_53 = arith.constant dense<0.000000e+00> : vector<16xf32>
    %155 = vector.multi_reduction <add>, %154, %cst_53 [1] : vector<16x32xf32> to vector<16xf32>
    %156 = vector.shape_cast %155 : vector<16xf32> to vector<16x1xf32>
    %cst_54 = arith.constant 3.125000e-02 : f32
    %157 = vector.broadcast %cst_54 : f32 to vector<16x1xf32>
    %158 = arith.mulf %156, %157 : vector<16x1xf32>
    %159 = vector.broadcast %158 : vector<16x1xf32> to vector<16x32xf32>
    %160 = arith.subf %154, %159 : vector<16x32xf32>
    %161 = arith.mulf %160, %160 : vector<16x32xf32>
    %cst_55 = arith.constant dense<0.000000e+00> : vector<16xf32>
    %162 = vector.multi_reduction <add>, %161, %cst_55 [1] : vector<16x32xf32> to vector<16xf32>
    %163 = vector.shape_cast %162 : vector<16xf32> to vector<16x1xf32>
    %cst_56 = arith.constant 3.125000e-02 : f32
    %164 = vector.broadcast %cst_56 : f32 to vector<16x1xf32>
    %165 = arith.mulf %163, %164 : vector<16x1xf32>
    %cst_57 = arith.constant 9.99999974E-6 : f32
    %166 = vector.broadcast %cst_57 : f32 to vector<16x1xf32>
    %167 = arith.addf %165, %166 : vector<16x1xf32>
    %168 = math.rsqrt %167 : vector<16x1xf32>
    %169 = vector.broadcast %168 : vector<16x1xf32> to vector<16x32xf32>
    %170 = arith.mulf %160, %169 : vector<16x32xf32>
    %171 = vector.broadcast %40 : vector<1x32xf32> to vector<16x32xf32>
    %172 = arith.mulf %170, %171 : vector<16x32xf32>
    %173 = vector.broadcast %41 : vector<1x32xf32> to vector<16x32xf32>
    %174 = arith.addf %172, %173 : vector<16x32xf32>
    %c1 = arith.constant 1 : index
    %c0_58 = arith.constant 0 : index
    %c0_59 = arith.constant 0 : index
    %175 = vector.load %arg8[%c1, %c0_58, %c0_59] : memref<2x7x64xf32, #tpu.memory_space<vmem>>, vector<1x7x64xf32>
    %176 = vector.shape_cast %175 : vector<1x7x64xf32> to vector<7x64xf32>
    %177 = vector.extract_strided_slice %176 {offsets = [0, 0], sizes = [1, 32], strides = [1, 1]} : vector<7x64xf32> to vector<1x32xf32>
    %178 = vector.extract_strided_slice %176 {offsets = [1, 0], sizes = [1, 32], strides = [1, 1]} : vector<7x64xf32> to vector<1x32xf32>
    %179 = vector.extract_strided_slice %176 {offsets = [2, 0], sizes = [1, 32], strides = [1, 1]} : vector<7x64xf32> to vector<1x32xf32>
    %180 = vector.extract_strided_slice %176 {offsets = [3, 0], sizes = [1, 32], strides = [1, 1]} : vector<7x64xf32> to vector<1x32xf32>
    %181 = vector.extract_strided_slice %176 {offsets = [4, 0], sizes = [1, 32], strides = [1, 1]} : vector<7x64xf32> to vector<1x32xf32>
    %182 = vector.extract_strided_slice %176 {offsets = [5, 0], sizes = [1, 32], strides = [1, 1]} : vector<7x64xf32> to vector<1x32xf32>
    %183 = vector.extract_strided_slice %176 {offsets = [6, 0], sizes = [1, 64], strides = [1, 1]} : vector<7x64xf32> to vector<1x64xf32>
    %c1_60 = arith.constant 1 : index
    %c0_61 = arith.constant 0 : index
    %c0_62 = arith.constant 0 : index
    %184 = vector.load %arg4[%c1_60, %c0_61, %c0_62] : memref<2x32x192xf32, #tpu.memory_space<vmem>>, vector<1x32x192xf32>
    %185 = vector.shape_cast %184 : vector<1x32x192xf32> to vector<32x192xf32>
    %cst_63 = arith.constant dense<0.000000e+00> : vector<16x192xf32>
    %186 = tpu.matmul %174, %185, %cst_63 {dimension_numbers = #tpu.dot_dimension_numbers<[1], [0], [0], [1], [0, 0, 1, 1], [], []>} : vector<16x32xf32>, vector<32x192xf32>, vector<16x192xf32> -> vector<16x192xf32>
    %c1_64 = arith.constant 1 : index
    %c0_65 = arith.constant 0 : index
    %c0_66 = arith.constant 0 : index
    %187 = vector.load %arg5[%c1_64, %c0_65, %c0_66] : memref<2x1x192xf32, #tpu.memory_space<vmem>>, vector<1x1x192xf32>
    %188 = vector.shape_cast %187 : vector<1x1x192xf32> to vector<1x192xf32>
    %189 = vector.broadcast %188 : vector<1x192xf32> to vector<16x192xf32>
    %190 = arith.addf %186, %189 : vector<16x192xf32>
    %cst_67 = arith.constant 0.000000e+00 : f32
    %191 = vector.broadcast %cst_67 : f32 to vector<16x32xf32>
    %192 = vector.extract_strided_slice %190 {offsets = [0, 0], sizes = [16, 8], strides = [1, 1]} : vector<16x192xf32> to vector<16x8xf32>
    %193 = vector.extract_strided_slice %190 {offsets = [0, 32], sizes = [16, 8], strides = [1, 1]} : vector<16x192xf32> to vector<16x8xf32>
    %cst_68 = arith.constant dense<0.000000e+00> : vector<16x16xf32>
    %194 = tpu.matmul %192, %193, %cst_68 {dimension_numbers = #tpu.dot_dimension_numbers<[1], [1], [0], [0], [0, 0, 1, 0], [], []>} : vector<16x8xf32>, vector<16x8xf32>, vector<16x16xf32> -> vector<16x16xf32>
    %195 = arith.addf %194, %27 : vector<16x16xf32>
    %cst_69 = arith.constant dense<0xFF800000> : vector<16xf32>
    %196 = vector.multi_reduction <maximumf>, %195, %cst_69 [1] : vector<16x16xf32> to vector<16xf32>
    %197 = vector.shape_cast %196 : vector<16xf32> to vector<16x1xf32>
    %198 = vector.broadcast %197 : vector<16x1xf32> to vector<16x16xf32>
    %199 = arith.subf %195, %198 : vector<16x16xf32>
    %200 = math.exp %199 : vector<16x16xf32>
    %cst_70 = arith.constant dense<0.000000e+00> : vector<16xf32>
    %201 = vector.multi_reduction <add>, %200, %cst_70 [1] : vector<16x16xf32> to vector<16xf32>
    %202 = vector.shape_cast %201 : vector<16xf32> to vector<16x1xf32>
    %203 = tpu.reciprocal %202 {approx = true} : vector<16x1xf32> -> vector<16x1xf32>
    %204 = vector.broadcast %203 : vector<16x1xf32> to vector<16x16xf32>
    %205 = arith.mulf %200, %204 : vector<16x16xf32>
    %206 = vector.extract_strided_slice %190 {offsets = [0, 64], sizes = [16, 32], strides = [1, 1]} : vector<16x192xf32> to vector<16x32xf32>
    %cst_71 = arith.constant dense<0.000000e+00> : vector<16x32xf32>
    %207 = tpu.matmul %205, %206, %cst_71 {dimension_numbers = #tpu.dot_dimension_numbers<[1], [0], [0], [1], [0, 0, 1, 1], [], []>} : vector<16x16xf32>, vector<16x32xf32>, vector<16x32xf32> -> vector<16x32xf32>
    %208 = arith.addf %191, %207 : vector<16x32xf32>
    %209 = vector.extract_strided_slice %190 {offsets = [0, 8], sizes = [16, 8], strides = [1, 1]} : vector<16x192xf32> to vector<16x8xf32>
    %210 = vector.extract_strided_slice %190 {offsets = [0, 40], sizes = [16, 8], strides = [1, 1]} : vector<16x192xf32> to vector<16x8xf32>
    %cst_72 = arith.constant dense<0.000000e+00> : vector<16x16xf32>
    %211 = tpu.matmul %209, %210, %cst_72 {dimension_numbers = #tpu.dot_dimension_numbers<[1], [1], [0], [0], [0, 0, 1, 0], [], []>} : vector<16x8xf32>, vector<16x8xf32>, vector<16x16xf32> -> vector<16x16xf32>
    %212 = arith.addf %211, %27 : vector<16x16xf32>
    %cst_73 = arith.constant dense<0xFF800000> : vector<16xf32>
    %213 = vector.multi_reduction <maximumf>, %212, %cst_73 [1] : vector<16x16xf32> to vector<16xf32>
    %214 = vector.shape_cast %213 : vector<16xf32> to vector<16x1xf32>
    %215 = vector.broadcast %214 : vector<16x1xf32> to vector<16x16xf32>
    %216 = arith.subf %212, %215 : vector<16x16xf32>
    %217 = math.exp %216 : vector<16x16xf32>
    %cst_74 = arith.constant dense<0.000000e+00> : vector<16xf32>
    %218 = vector.multi_reduction <add>, %217, %cst_74 [1] : vector<16x16xf32> to vector<16xf32>
    %219 = vector.shape_cast %218 : vector<16xf32> to vector<16x1xf32>
    %220 = tpu.reciprocal %219 {approx = true} : vector<16x1xf32> -> vector<16x1xf32>
    %221 = vector.broadcast %220 : vector<16x1xf32> to vector<16x16xf32>
    %222 = arith.mulf %217, %221 : vector<16x16xf32>
    %223 = vector.extract_strided_slice %190 {offsets = [0, 96], sizes = [16, 32], strides = [1, 1]} : vector<16x192xf32> to vector<16x32xf32>
    %cst_75 = arith.constant dense<0.000000e+00> : vector<16x32xf32>
    %224 = tpu.matmul %222, %223, %cst_75 {dimension_numbers = #tpu.dot_dimension_numbers<[1], [0], [0], [1], [0, 0, 1, 1], [], []>} : vector<16x16xf32>, vector<16x32xf32>, vector<16x32xf32> -> vector<16x32xf32>
    %225 = arith.addf %208, %224 : vector<16x32xf32>
    %226 = vector.extract_strided_slice %190 {offsets = [0, 16], sizes = [16, 8], strides = [1, 1]} : vector<16x192xf32> to vector<16x8xf32>
    %227 = vector.extract_strided_slice %190 {offsets = [0, 48], sizes = [16, 8], strides = [1, 1]} : vector<16x192xf32> to vector<16x8xf32>
    %cst_76 = arith.constant dense<0.000000e+00> : vector<16x16xf32>
    %228 = tpu.matmul %226, %227, %cst_76 {dimension_numbers = #tpu.dot_dimension_numbers<[1], [1], [0], [0], [0, 0, 1, 0], [], []>} : vector<16x8xf32>, vector<16x8xf32>, vector<16x16xf32> -> vector<16x16xf32>
    %229 = arith.addf %228, %27 : vector<16x16xf32>
    %cst_77 = arith.constant dense<0xFF800000> : vector<16xf32>
    %230 = vector.multi_reduction <maximumf>, %229, %cst_77 [1] : vector<16x16xf32> to vector<16xf32>
    %231 = vector.shape_cast %230 : vector<16xf32> to vector<16x1xf32>
    %232 = vector.broadcast %231 : vector<16x1xf32> to vector<16x16xf32>
    %233 = arith.subf %229, %232 : vector<16x16xf32>
    %234 = math.exp %233 : vector<16x16xf32>
    %cst_78 = arith.constant dense<0.000000e+00> : vector<16xf32>
    %235 = vector.multi_reduction <add>, %234, %cst_78 [1] : vector<16x16xf32> to vector<16xf32>
    %236 = vector.shape_cast %235 : vector<16xf32> to vector<16x1xf32>
    %237 = tpu.reciprocal %236 {approx = true} : vector<16x1xf32> -> vector<16x1xf32>
    %238 = vector.broadcast %237 : vector<16x1xf32> to vector<16x16xf32>
    %239 = arith.mulf %234, %238 : vector<16x16xf32>
    %240 = vector.extract_strided_slice %190 {offsets = [0, 128], sizes = [16, 32], strides = [1, 1]} : vector<16x192xf32> to vector<16x32xf32>
    %cst_79 = arith.constant dense<0.000000e+00> : vector<16x32xf32>
    %241 = tpu.matmul %239, %240, %cst_79 {dimension_numbers = #tpu.dot_dimension_numbers<[1], [0], [0], [1], [0, 0, 1, 1], [], []>} : vector<16x16xf32>, vector<16x32xf32>, vector<16x32xf32> -> vector<16x32xf32>
    %242 = arith.addf %225, %241 : vector<16x32xf32>
    %243 = vector.extract_strided_slice %190 {offsets = [0, 24], sizes = [16, 8], strides = [1, 1]} : vector<16x192xf32> to vector<16x8xf32>
    %244 = vector.extract_strided_slice %190 {offsets = [0, 56], sizes = [16, 8], strides = [1, 1]} : vector<16x192xf32> to vector<16x8xf32>
    %cst_80 = arith.constant dense<0.000000e+00> : vector<16x16xf32>
    %245 = tpu.matmul %243, %244, %cst_80 {dimension_numbers = #tpu.dot_dimension_numbers<[1], [1], [0], [0], [0, 0, 1, 0], [], []>} : vector<16x8xf32>, vector<16x8xf32>, vector<16x16xf32> -> vector<16x16xf32>
    %246 = arith.addf %245, %27 : vector<16x16xf32>
    %cst_81 = arith.constant dense<0xFF800000> : vector<16xf32>
    %247 = vector.multi_reduction <maximumf>, %246, %cst_81 [1] : vector<16x16xf32> to vector<16xf32>
    %248 = vector.shape_cast %247 : vector<16xf32> to vector<16x1xf32>
    %249 = vector.broadcast %248 : vector<16x1xf32> to vector<16x16xf32>
    %250 = arith.subf %246, %249 : vector<16x16xf32>
    %251 = math.exp %250 : vector<16x16xf32>
    %cst_82 = arith.constant dense<0.000000e+00> : vector<16xf32>
    %252 = vector.multi_reduction <add>, %251, %cst_82 [1] : vector<16x16xf32> to vector<16xf32>
    %253 = vector.shape_cast %252 : vector<16xf32> to vector<16x1xf32>
    %254 = tpu.reciprocal %253 {approx = true} : vector<16x1xf32> -> vector<16x1xf32>
    %255 = vector.broadcast %254 : vector<16x1xf32> to vector<16x16xf32>
    %256 = arith.mulf %251, %255 : vector<16x16xf32>
    %257 = vector.extract_strided_slice %190 {offsets = [0, 160], sizes = [16, 32], strides = [1, 1]} : vector<16x192xf32> to vector<16x32xf32>
    %cst_83 = arith.constant dense<0.000000e+00> : vector<16x32xf32>
    %258 = tpu.matmul %256, %257, %cst_83 {dimension_numbers = #tpu.dot_dimension_numbers<[1], [0], [0], [1], [0, 0, 1, 1], [], []>} : vector<16x16xf32>, vector<16x32xf32>, vector<16x32xf32> -> vector<16x32xf32>
    %259 = arith.addf %242, %258 : vector<16x32xf32>
    %260 = arith.addf %174, %259 : vector<16x32xf32>
    %261 = vector.broadcast %177 : vector<1x32xf32> to vector<16x32xf32>
    %262 = arith.addf %260, %261 : vector<16x32xf32>
    %cst_84 = arith.constant dense<0.000000e+00> : vector<16xf32>
    %263 = vector.multi_reduction <add>, %262, %cst_84 [1] : vector<16x32xf32> to vector<16xf32>
    %264 = vector.shape_cast %263 : vector<16xf32> to vector<16x1xf32>
    %cst_85 = arith.constant 3.125000e-02 : f32
    %265 = vector.broadcast %cst_85 : f32 to vector<16x1xf32>
    %266 = arith.mulf %264, %265 : vector<16x1xf32>
    %267 = vector.broadcast %266 : vector<16x1xf32> to vector<16x32xf32>
    %268 = arith.subf %262, %267 : vector<16x32xf32>
    %269 = arith.mulf %268, %268 : vector<16x32xf32>
    %cst_86 = arith.constant dense<0.000000e+00> : vector<16xf32>
    %270 = vector.multi_reduction <add>, %269, %cst_86 [1] : vector<16x32xf32> to vector<16xf32>
    %271 = vector.shape_cast %270 : vector<16xf32> to vector<16x1xf32>
    %cst_87 = arith.constant 3.125000e-02 : f32
    %272 = vector.broadcast %cst_87 : f32 to vector<16x1xf32>
    %273 = arith.mulf %271, %272 : vector<16x1xf32>
    %cst_88 = arith.constant 9.99999974E-6 : f32
    %274 = vector.broadcast %cst_88 : f32 to vector<16x1xf32>
    %275 = arith.addf %273, %274 : vector<16x1xf32>
    %276 = math.rsqrt %275 : vector<16x1xf32>
    %277 = vector.broadcast %276 : vector<16x1xf32> to vector<16x32xf32>
    %278 = arith.mulf %268, %277 : vector<16x32xf32>
    %279 = vector.broadcast %178 : vector<1x32xf32> to vector<16x32xf32>
    %280 = arith.mulf %278, %279 : vector<16x32xf32>
    %281 = vector.broadcast %179 : vector<1x32xf32> to vector<16x32xf32>
    %282 = arith.addf %280, %281 : vector<16x32xf32>
    %c1_89 = arith.constant 1 : index
    %c0_90 = arith.constant 0 : index
    %c0_91 = arith.constant 0 : index
    %283 = vector.load %arg6[%c1_89, %c0_90, %c0_91] : memref<2x32x64xf32, #tpu.memory_space<vmem>>, vector<1x32x64xf32>
    %284 = vector.shape_cast %283 : vector<1x32x64xf32> to vector<32x64xf32>
    %cst_92 = arith.constant dense<0.000000e+00> : vector<16x64xf32>
    %285 = tpu.matmul %282, %284, %cst_92 {dimension_numbers = #tpu.dot_dimension_numbers<[1], [0], [0], [1], [0, 0, 1, 1], [], []>} : vector<16x32xf32>, vector<32x64xf32>, vector<16x64xf32> -> vector<16x64xf32>
    %286 = vector.broadcast %183 : vector<1x64xf32> to vector<16x64xf32>
    %287 = arith.addf %285, %286 : vector<16x64xf32>
    %cst_93 = arith.constant 0.000000e+00 : f32
    %288 = vector.broadcast %cst_93 : f32 to vector<16x64xf32>
    %289 = arith.maximumf %287, %288 : vector<16x64xf32>
    %c1_94 = arith.constant 1 : index
    %c0_95 = arith.constant 0 : index
    %c0_96 = arith.constant 0 : index
    %290 = vector.load %arg7[%c1_94, %c0_95, %c0_96] : memref<2x64x32xf32, #tpu.memory_space<vmem>>, vector<1x64x32xf32>
    %291 = vector.shape_cast %290 : vector<1x64x32xf32> to vector<64x32xf32>
    %cst_97 = arith.constant dense<0.000000e+00> : vector<16x32xf32>
    %292 = tpu.matmul %289, %291, %cst_97 {dimension_numbers = #tpu.dot_dimension_numbers<[1], [0], [0], [1], [0, 0, 1, 1], [], []>} : vector<16x64xf32>, vector<64x32xf32>, vector<16x32xf32> -> vector<16x32xf32>
    %293 = vector.broadcast %180 : vector<1x32xf32> to vector<16x32xf32>
    %294 = arith.addf %292, %293 : vector<16x32xf32>
    %295 = arith.addf %282, %294 : vector<16x32xf32>
    %cst_98 = arith.constant dense<0.000000e+00> : vector<16xf32>
    %296 = vector.multi_reduction <add>, %295, %cst_98 [1] : vector<16x32xf32> to vector<16xf32>
    %297 = vector.shape_cast %296 : vector<16xf32> to vector<16x1xf32>
    %cst_99 = arith.constant 3.125000e-02 : f32
    %298 = vector.broadcast %cst_99 : f32 to vector<16x1xf32>
    %299 = arith.mulf %297, %298 : vector<16x1xf32>
    %300 = vector.broadcast %299 : vector<16x1xf32> to vector<16x32xf32>
    %301 = arith.subf %295, %300 : vector<16x32xf32>
    %302 = arith.mulf %301, %301 : vector<16x32xf32>
    %cst_100 = arith.constant dense<0.000000e+00> : vector<16xf32>
    %303 = vector.multi_reduction <add>, %302, %cst_100 [1] : vector<16x32xf32> to vector<16xf32>
    %304 = vector.shape_cast %303 : vector<16xf32> to vector<16x1xf32>
    %cst_101 = arith.constant 3.125000e-02 : f32
    %305 = vector.broadcast %cst_101 : f32 to vector<16x1xf32>
    %306 = arith.mulf %304, %305 : vector<16x1xf32>
    %cst_102 = arith.constant 9.99999974E-6 : f32
    %307 = vector.broadcast %cst_102 : f32 to vector<16x1xf32>
    %308 = arith.addf %306, %307 : vector<16x1xf32>
    %309 = math.rsqrt %308 : vector<16x1xf32>
    %310 = vector.broadcast %309 : vector<16x1xf32> to vector<16x32xf32>
    %311 = arith.mulf %301, %310 : vector<16x32xf32>
    %312 = vector.broadcast %181 : vector<1x32xf32> to vector<16x32xf32>
    %313 = arith.mulf %311, %312 : vector<16x32xf32>
    %314 = vector.broadcast %182 : vector<1x32xf32> to vector<16x32xf32>
    %315 = arith.addf %313, %314 : vector<16x32xf32>
    %c0_103 = arith.constant 0 : index
    %c0_104 = arith.constant 0 : index
    %316 = vector.load %arg9[%c0_103, %c0_104] : memref<32x16xf32, #tpu.memory_space<vmem>>, vector<32x16xf32>
    %cst_105 = arith.constant dense<0.000000e+00> : vector<16x16xf32>
    %317 = tpu.matmul %315, %316, %cst_105 {dimension_numbers = #tpu.dot_dimension_numbers<[1], [0], [0], [1], [0, 0, 1, 1], [], []>} : vector<16x32xf32>, vector<32x16xf32>, vector<16x16xf32> -> vector<16x16xf32>
    %c0_106 = arith.constant 0 : index
    %c0_107 = arith.constant 0 : index
    %318 = vector.load %arg10[%c0_106, %c0_107] : memref<1x16xf32, #tpu.memory_space<vmem>>, vector<1x16xf32>
    %319 = vector.broadcast %318 : vector<1x16xf32> to vector<16x16xf32>
    %320 = arith.addf %317, %319 : vector<16x16xf32>
    %c0_108 = arith.constant 0 : index
    %c0_109 = arith.constant 0 : index
    %321 = vector.load %arg11[%c0_108, %c0_109] : memref<16x16xf32, #tpu.memory_space<vmem>>, vector<16x16xf32>
    tpu.vector_store %arg11[%c0_108, %c0_109], %320 {strides = array<i32>} : memref<16x16xf32, #tpu.memory_space<vmem>>, vector<16x16xf32>,
    return
  }
  func.func @transform_0(%arg0: i32) -> (i32, i32) {
    %c0_i32 = arith.constant 0 : i32
    %c0_i32_0 = arith.constant 0 : i32
    return %arg0, %c0_i32 : i32, i32
  }
  func.func @transform_1(%arg0: i32) -> (i32, i32) {
    %c0_i32 = arith.constant 0 : i32
    %c0_i32_0 = arith.constant 0 : i32
    %c0_i32_1 = arith.constant 0 : i32
    return %c0_i32, %c0_i32_0 : i32, i32
  }
  func.func @transform_2(%arg0: i32) -> (i32, i32) {
    %c0_i32 = arith.constant 0 : i32
    %c0_i32_0 = arith.constant 0 : i32
    %c0_i32_1 = arith.constant 0 : i32
    return %c0_i32, %c0_i32_0 : i32, i32
  }
  func.func @transform_3(%arg0: i32) -> (i32, i32, i32) {
    %c0_i32 = arith.constant 0 : i32
    %c0_i32_0 = arith.constant 0 : i32
    %c0_i32_1 = arith.constant 0 : i32
    %c0_i32_2 = arith.constant 0 : i32
    return %c0_i32, %c0_i32_0, %c0_i32_1 : i32, i32, i32
  }
  func.func @transform_4(%arg0: i32) -> (i32, i32, i32) {
    %c0_i32 = arith.constant 0 : i32
    %c0_i32_0 = arith.constant 0 : i32
    %c0_i32_1 = arith.constant 0 : i32
    %c0_i32_2 = arith.constant 0 : i32
    return %c0_i32, %c0_i32_0, %c0_i32_1 : i32, i32, i32
  }
  func.func @transform_5(%arg0: i32) -> (i32, i32, i32) {
    %c0_i32 = arith.constant 0 : i32
    %c0_i32_0 = arith.constant 0 : i32
    %c0_i32_1 = arith.constant 0 : i32
    %c0_i32_2 = arith.constant 0 : i32
    return %c0_i32, %c0_i32_0, %c0_i32_1 : i32, i32, i32
  }
  func.func @transform_6(%arg0: i32) -> (i32, i32, i32) {
    %c0_i32 = arith.constant 0 : i32
    %c0_i32_0 = arith.constant 0 : i32
    %c0_i32_1 = arith.constant 0 : i32
    %c0_i32_2 = arith.constant 0 : i32
    return %c0_i32, %c0_i32_0, %c0_i32_1 : i32, i32, i32
  }
  func.func @transform_7(%arg0: i32) -> (i32, i32, i32) {
    %c0_i32 = arith.constant 0 : i32
    %c0_i32_0 = arith.constant 0 : i32
    %c0_i32_1 = arith.constant 0 : i32
    %c0_i32_2 = arith.constant 0 : i32
    return %c0_i32, %c0_i32_0, %c0_i32_1 : i32, i32, i32
  }
  func.func @transform_8(%arg0: i32) -> (i32, i32) {
    %c0_i32 = arith.constant 0 : i32
    %c0_i32_0 = arith.constant 0 : i32
    %c0_i32_1 = arith.constant 0 : i32
    return %c0_i32, %c0_i32_0 : i32, i32
  }
  func.func @transform_9(%arg0: i32) -> (i32, i32) {
    %c0_i32 = arith.constant 0 : i32
    %c0_i32_0 = arith.constant 0 : i32
    %c0_i32_1 = arith.constant 0 : i32
    return %c0_i32, %c0_i32_0 : i32, i32
  }
  func.func @transform_10(%arg0: i32) -> (i32, i32) {
    %c0_i32 = arith.constant 0 : i32
    %c0_i32_0 = arith.constant 0 : i32
    return %arg0, %c0_i32 : i32, i32
  }
}

</mosaic_0001>

<bundles_post_ra>
// kernel: tpu_custom_call.1
= control target key start
LH: loop header
LB: loop body
LE: loop exit
PB: predicated region body
PF: predicated region fallthrough
CT: control target
= control target key end

     0   :  { %15 = vsyncpa [#allocation3], 0  ;;  %s3832_s0 = inlined_call_operand.hbm [shape: f32[16,20], index: 0, kind: input, shape index: {}]   ;;  %s3833_s1 = inlined_call_operand.vmem [shape: f32[20,32], index: 1, kind: input, shape index: {}]   ;;  %s3834_s2 = inlined_call_operand.hbm [shape: f32[1,32], index: 2, kind: input, shape index: {}]   ;;  %s3835_s3 = inlined_call_operand.vmem [shape: f32[2,32,192], index: 3, kind: input, shape index: {}]   ;;  %s3836_s4 = inlined_call_operand.hbm [shape: f32[2,1,192], index: 4, kind: input, shape index: {}]   ;;  %s3837_s5 = inlined_call_operand.vmem [shape: f32[2,32,64], index: 5, kind: input, shape index: {}]   ;;  %s3838_s6 = inlined_call_operand.vmem [shape: f32[2,64,32], index: 6, kind: input, shape index: {}]   ;;  %s3839_s7 = inlined_call_operand.vmem [shape: f32[2,7,64], index: 7, kind: input, shape index: {}]   ;;  %s3840_s8 = inlined_call_operand.vmem [shape: f32[32,16], index: 8, kind: input, shape index: {}]   ;;  %s3841_s9 = inlined_call_operand.vmem [shape: f32[1,16], index: 9, kind: input, shape index: {}]   ;;  %s3842_s10 = inlined_call_operand.hbm [shape: f32[16,16], index: 10, kind: output, shape index: {}]  }
   0x1   :  { %16 = vsyncpa [#allocation6], 0 }
   0x2   :  { %17 = vsyncpa [#allocation4], 0  ;;  %s3240_s13 = smov [#allocation5]   ;;  %s3241_s15 = smov [#allocation2]  }
   0x3   :  { %s38_s14 = sshll.u32 %s3240_s13, 4  ;;  %s23_s16 = sshll.u32 %s3241_s15, 4  ;;  %s39_s14 = int_to_ptr.vmem [resolvable:$true] %s38_s14  ;;  %s24_s16 = int_to_ptr.vmem [resolvable:$true] %s23_s16 }
   0x4   :  { %s3162_s17 = scalar_lea.vmem %s39_s14, 16  ;;  %s3166_s18 = scalar_lea.vmem %s39_s14, 32 }
   0x5   :  { %p3163_p0 = scmp.ne.s32.totalorder %s39_s14, %s3162_s17  ;;  %p3167_p1 = scmp.lt.s32.totalorder %s39_s14, %s39_s14 }
   0x6   :  { %p3168_p2 = scmp.lt.s32.totalorder %s3166_s18, %s3162_s17 }
   0x8   :  { %p3169_p3 = por %p3168_p2, %p3167_p1 }
   0xa   :  { %p3170_p4 = pnand %p3169_p3, %p3163_p0 }
   0xc   :  { %3173 = shalt.err (!%p3170_p4)
}
   0xd   :  { %41 = dma.hbm_to_vmem [thread:$0]  %s3834_s2, 16, %s39_s14, [#allocation6]  }
   0xe   :  { %s3182_s21 = scalar_lea.vmem %s24_s16, 256  ;;  %p3187_p6 = scmp.lt.s32.totalorder %s24_s16, %s24_s16 }
   0xf   :  { %p3183_p5 = scmp.ne.s32.totalorder %s24_s16, %s3182_s21  ;;  %p3188_p7 = scmp.lt.s32.totalorder %s3182_s21, %s3182_s21 }
  0x11   :  { %p3189_p8 = por %p3188_p7, %p3187_p6 }
  0x13   :  { %p3190_p9 = pnand %p3189_p8, %p3183_p5 }
  0x15   :  { %3193 = shalt.err (!%p3190_p9)
}
  0x16   :  { %s3242_s22 = smov 128   ;;  %s3243_s23 = smov 8  }
  0x17   :  { %29 = dma.hbm_to_vmem [thread:$0]  %s3832_s0, 256, %s24_s16, [#allocation3], %s3242_s22, %s3242_s22, %s3243_s23  }
  0x18   :  { %s3244_s26 = smov [#allocation7]  }
  0x19   :  { %s49_s27 = sshll.u32 %s3244_s26, 4  ;;  %s50_s27 = int_to_ptr.vmem [resolvable:$true] %s49_s27 }
  0x1a   :  { %s3202_s2 = scalar_lea.vmem %s50_s27, 64  ;;  %p3207_p11 = scmp.lt.s32.totalorder %s50_s27, %s50_s27 }
  0x1b   :  { %p3203_p10 = scmp.ne.s32.totalorder %s50_s27, %s3202_s2  ;;  %p3208_p12 = scmp.lt.s32.totalorder %s3202_s2, %s3202_s2 }
  0x1d   :  { %p3209_p13 = por %p3208_p12, %p3207_p11 }
  0x1f   :  { %p3210_p0 = pnand %p3209_p13, %p3203_p10 }
  0x21   :  { %3213 = shalt.err (!%p3210_p0)
}
  0x22   :  { %s3245_s28 = smov 32   ;;  %s3246_s29 = smov 2  }
  0x23   :  { %55 = dma.hbm_to_vmem [thread:$0]  %s3836_s4, 64, %s50_s27, [#allocation6], %s3245_s28, %s3245_s28, %s3246_s29  }
  0x24   :  { %3234 = dma.done.wait [#allocation3], 256  }
  0x25   :  { %3235 = vsyncadd [#allocation3], 4294967040 }
  0x26   :  { %3236 = dma.done.wait [#allocation6], 80  }
  0x27   :  { %3237 = vsyncadd [#allocation6], 4294967216  ;;  %vm125_vm0 = vcmask 1043456   ;;  %vm118_vm1 = vcmask 162816   ;;  %v110_v0 = vld [vmem:[%s3833_s1 + $0x10] sm:$0xf]  ;;  %v78_v19 = vlaneseq }
  0x28   :  { %v109_v1 = vld [vmem:[%s3833_s1 + $0x8] sm:$0xff]  ;;  %2864 = vmatprep.subr.msk.mxu0 %vm125_vm0, %v110_v0  ;;  %v106_v2 = vld [vmem:[#allocation2] sm:$0xff]  ;;  %v212_v3 = vld [vmem:[%s3835_s3 + $0x38] sm:$0xff]  ;;  %v3247_v13 = vmov 0.0   ;;  %vm225_vm2 = vcmask 261120   ;;  %vm315_vm3 = vcmask 64512  }
  0x29   :  { %2865 = vmatpush3.msk.msra.mxu0 %vm125_vm0, %v110_v0  ;;  %v108_v4 = vld [vmem:[%s3833_s1] sm:$0xff]  ;;  %2870 = vmatprep.mubr.msk.f32.mxu0 %vm118_vm1, %v106_v2  ;;  %v211_v5 = vld [vmem:[%s3835_s3 + $0x30] sm:$0xff]  ;;  %v210_v6 = vld [vmem:[%s3835_s3 + $0x28] sm:$0xff]  ;;  %v3372_v20 = vshrl.u32 %v78_v19, 7  ;;  %s3248_s12 = smov 120   ;;  %s3249_s13 = smov 88  }
  0x2a   :  { %2866 = vmatprep.subr.mxu0 %v109_v1  ;;  %256 = vmatprep.subr.mxu1 %v212_v3  ;;  %v107_v7 = vld [vmem:[#allocation2 + $0x8] sm:$0xff]  ;;  %v209_v8 = vld [vmem:[%s3835_s3 + $0x20] sm:$0xff]  ;;  %v208_v9 = vld [vmem:[%s3835_s3 + $0x18] sm:$0xff]  ;;  %v79_v33 = vand.u32 127, %v78_v19  ;;  %v3250_v35 = vmov -1e+30  }
  0x2b   :  { %2867 = vmatpush3.msra.mxu0 %v109_v1  ;;  %257 = vmatpush1.msra.mxu1 %v211_v5  ;;  %v207_v10 = vld [vmem:[%s3835_s3 + $0x10] sm:$0xff]  ;;  %v206_v11 = vld [vmem:[%s3835_s3 + $0x8] sm:$0xff]  ;;  %v205_v12 = vld [vmem:[%s3835_s3] sm:$0xff]  ;;  %v3375_v21 = vsub.s32 0, %v3372_v20  ;;  %vm399_vm8 = vcmask 130048   ;;  %s3251_s14 = smov 96  }
  0x2c   :  { %2868 = vmatprep.subr.mxu0 %v108_v4  ;;  %258 = vmatprep.subr.mxu1 %v210_v6  ;;  %v2669_v15 = vld [vmem:[#allocation5] ss:$0 sm:$0xff]  ;;  %v3377_v22 = vld [vmem:[#allocation7] sm:$0x3]  ;;  %vm97_vm4 = vcmp.ge.s32.totalorder %v79_v33, 8  ;;  %vm98_vm5 = vcmp.lt.s32.totalorder %v79_v33, 16 }
  0x2d   :  { %2869 = vmatpush3.msra.mxu0 %v108_v4  ;;  %259 = vmatpush1.msra.mxu1 %v209_v8  ;;  %v218_v23 = vrot.slane %v3377_v22, %v3375_v21  ;;  %vm99_vm6 = vmand %vm97_vm4, %vm98_vm5  ;;  %vm87_vm7 = vcmp.lt.s32.totalorder %v79_v33, 8  ;;  %s3252_s15 = smov 80   ;;  %s3253_s16 = smov 112   ;;  %vm1258_vm9 = vcmask 523264  }
  0x2e   :  { %2871 = vmatmul.mubr.msk.f32.vlgmr.msra.gmra.mxu0 %vm118_vm1, %v107_v7  ;;  %260 = vmatprep.subr.mxu1 %v208_v9  ;;  %v3405_v36 = vsel %vm99_vm6, 0.0, %v3250_v35  ;;  %v3407_v38 = vsel %vm87_vm7, 0.0, %v3250_v35  ;;  %s3254_s4 = smov 64   ;;  %s3255_s17 = smov 72  }
  0x2f   :  { %261 = vmatpush1.msra.mxu1 %v207_v10  ;;  %296 = vmatprep.mubr.f32.mxu1 %v3247_v13  ;;  %s3256_s18 = smov 104  }
  0x30   :  { %262 = vmatprep.subr.mxu1 %v206_v11 }
  0x31   :  { %263 = vmatpush1.msra.mxu1 %v205_v12 }
  0xee   :  { %v2872_v14 = vpop.f32.mrf.mxu0 }
  0xef   :  { %v3368_v18 = vadd.f32 %v2872_v14, %v2669_v15 }
  0xf0   :  { %v195_v16 = vpop.f32.mrf.mxu0 }
  0xf1   :  { %v3363_v17 = vadd.f32 %v2669_v15, %v195_v16 }
  0xf3   :  { %2673 = vmatmul.mubr.msk.f32.vlgmr.msra.gmra.mxu1 %vm225_vm2, %v3363_v17 }
  0xf4   :  { %302 = vmatprep.mubr.f32.mxu1 %v3247_v13 }
  0xf7   :  { %2674 = vmatmul.mubr.msk.f32.gmra.mxu1 %vm225_vm2, %v3368_v18 }
 0x1b3   :  { %v298_v24 = vpop.f32.mrf.mxu1 }
 0x1b4   :  { %v3381_v25 = vadd.f32 %v298_v24, %v218_v23 }
 0x1b5   :  { %v3383_v26 = vpop.f32.mrf.mxu1 }
 0x1b6   :  { %422 = vrot.lane.b32.xlu1 %v3381_v25, %s3248_s12  ;;  %2877 = vmatprep.mubr.msk.f32.mxu0 %vm315_vm3, %v3381_v25 }
 0x1b7   :  { %v304_v27 = vpop.f32.mrf.mxu1 }
 0x1b8   :  { %v3389_v28 = vadd.f32 %v304_v27, %v218_v23 }
 0x1b9   :  { %v3403_v34 = vpop.f32.mrf.mxu1 }
 0x1ba   :  { %428 = vrot.lane.b32.xlu0 %v3389_v28, %s3249_s13  ;;  %424 = vrot.lane.b32.xlu1 %v3389_v28, %s3248_s12 }
 0x1be   :  { %426 = vrot.lane.b32.xlu0 %v3381_v25, %s3249_s13 }
 0x228   :  { %v423_v29 = vpop.permute.xlu1 %422 }
 0x229   :  { %2884 = vmatprep.mubr.msk.f32.mxu1 %vm315_vm3, %v423_v29 }
 0x22c   :  { %v429_v30 = vpop.permute.xlu0 %428  ;;  %v425_v32 = vpop.permute.xlu1 %424 }
 0x22d   :  { %2880 = vmatprep.subr.msk.mxu1 %vm315_vm3, %v429_v30 }
 0x22e   :  { %2881 = vmatpush3.xpose.msk.msra.mxu1 %vm315_vm3, %v429_v30 }
 0x230   :  { %v427_v31 = vpop.permute.xlu0 %426 }
 0x231   :  { %2882 = vmatprep.subr.msk.mxu1 %vm315_vm3, %v427_v31 }
 0x232   :  { %2883 = vmatpush3.xpose.msk.msra.mxu1 %vm315_vm3, %v427_v31 }
 0x235   :  { %2885 = vmatmul.mubr.msk.f32.vlgmr.msra.gmra.mxu1 %vm315_vm3, %v425_v32 }
 0x2f5   :  { %v2886_v37 = vpop.f32.mrf.mxu1 }
 0x2f6   :  { %v510_v39 = vadd.f32 %v2886_v37, %v3405_v36 }
 0x2f7   :  { %v504_v40 = vpop.f32.mrf.mxu1 }
 0x2f8   :  { %v505_v41 = vadd.f32 %v504_v40, %v3407_v38  ;;  %v516_v42 = vsel %vm399_vm8, %v510_v39, -inf }
 0x2f9   :  { %517 = vmax.xlane.f32.xlu1 %v516_v42 }
 0x2fa   :  { %v513_v43 = vsel %vm399_vm8, %v505_v41, -inf }
 0x2fb   :  { %514 = vmax.xlane.f32.xlu0 %v513_v43 }
 0x30a   :  { %313 = vrot.lane.b32.xlu1 %v3389_v28, %s3251_s14 }
 0x30e   :  { %537 = vrot.lane.b32.xlu1 %v3389_v28, %s3245_s28 }
 0x311   :  { %311 = vrot.lane.b32.xlu0 %v3381_v25, %s3251_s14 }
 0x312   :  { %535 = vrot.lane.b32.xlu1 %v3381_v25, %s3245_s28 }
 0x316   :  { %713 = vrot.lane.b32.xlu1 %v3381_v25, %s3252_s15 }
 0x31a   :  { %711 = vrot.lane.b32.xlu1 %v3389_v28, %s3253_s16 }
 0x382   :  { %v518_v44 = vpop.xlane.xlu1 %517 }
 0x383   :  { %v520_v45 = vsub.f32 %v510_v39, %v518_v44 }
 0x384   :  { %v515_v46 = vpop.xlane.xlu0 %514 }
 0x385   :  { %v523_v47 = vmul.f32 1.442695, %v520_v45  ;;  %v519_v48 = vsub.f32 %v505_v41, %v515_v46 }
 0x386   :  { %v314_v49 = vpop.permute.xlu1 %313 }
 0x387   :  { %3074 = vpow2.f32 %v523_v47  ;;  %v521_v50 = vmul.f32 1.442695, %v519_v48  ;;  %2873 = vmatprep.subr.msk.mxu0 %vm315_vm3, %v314_v49 }
 0x388   :  { %2874 = vmatpush3.xpose.msk.msra.mxu0 %vm315_vm3, %v314_v49  ;;  %v312_v51 = vpop.permute.xlu0 %311 }
 0x389   :  { %3076 = vpow2.f32 %v521_v50  ;;  %2875 = vmatprep.subr.msk.mxu0 %vm315_vm3, %v312_v51 }
 0x38a   :  { %v538_v52 = vpop.permute.xlu1 %537 }
 0x38c   :  { %2876 = vmatpush3.xpose.msk.msra.mxu0 %vm315_vm3, %v312_v51 }
 0x38d   :  { %2887 = vmatprep.subr.mxu0 %v538_v52 }
 0x38e   :  { %v536_v53 = vpop.permute.xlu1 %535 }
 0x38f   :  { %2878 = vmatmul.mubr.msk.f32.vlgmr.msra.gmra.mxu0 %vm315_vm3, %v3389_v28 }
 0x390   :  { %2888 = vmatpush3.msra.mxu0 %v538_v52 }
 0x391   :  { %2889 = vmatprep.subr.mxu0 %v536_v53 }
 0x392   :  { %2890 = vmatpush3.msra.mxu0 %v536_v53  ;;  %v714_v2 = vpop.permute.xlu1 %713 }
 0x394   :  { %v3075_v54 = vpop.eup %3074 }
 0x395   :  { %v528_v55 = vsel %vm399_vm8, %v3075_v54, 0.0 }
 0x396   :  { %v3077_v56 = vpop.eup %3076  ;;  %529 = vadd.xlane.f32.xlu0 %v528_v55  ;;  %v712_v3 = vpop.permute.xlu1 %711 }
 0x397   :  { %v525_v57 = vsel %vm399_vm8, %v3077_v56, 0.0 }
 0x39a   :  { %526 = vadd.xlane.f32.xlu0 %v525_v57 }
 0x3b0   :  { %715 = vrot.lane.b32.xlu0 %v3389_v28, %s3252_s15 }
 0x3b4   :  { %709 = vrot.lane.b32.xlu0 %v3381_v25, %s3253_s16 }
 0x41f   :  { %v530_v58 = vpop.xlane.xlu0 %529 }
 0x420   :  { %3078 = vrcp.f32 %v530_v58  ;;  %v3475_v58 = vsub.s32 1, %v3372_v20 }
 0x423   :  { %v527_v59 = vpop.xlane.xlu0 %526 }
 0x424   :  { %3080 = vrcp.f32 %v527_v59 }
 0x427   :  { %v716_v60 = vpop.permute.xlu0 %715 }
 0x428   :  { %2901 = vmatprep.subr.msk.mxu0 %vm315_vm3, %v716_v60 }
 0x42b   :  { %v710_v1 = vpop.permute.xlu0 %709 }
 0x42d   :  { %v3079_v61 = vpop.eup %3078 }
 0x42e   :  { %v534_v0 = vmul.f32 %v3079_v61, %v3075_v54 }
 0x431   :  { %v3081_v62 = vpop.eup %3080 }
 0x432   :  { %v533_v63 = vmul.f32 %v3081_v62, %v3077_v56 }
 0x434   :  { %2891 = vmatprep.mubr.msk.f32.mxu0 %vm399_vm8, %v533_v63 }
 0x435   :  { %2892 = vmatmul.mubr.msk.f32.vlgmr.msra.gmra.mxu0 %vm399_vm8, %v534_v0 }
 0x436   :  { %2902 = vmatpush3.xpose.msk.msra.mxu0 %vm315_vm3, %v716_v60  ;;  %2905 = vmatprep.mubr.msk.f32.mxu0 %vm315_vm3, %v710_v1 }
 0x437   :  { %2903 = vmatprep.subr.msk.mxu0 %vm315_vm3, %v714_v2 }
 0x43a   :  { %2904 = vmatpush3.xpose.msk.msra.mxu0 %vm315_vm3, %v714_v2 }
 0x43d   :  { %2906 = vmatmul.mubr.msk.f32.vlgmr.msra.gmra.mxu0 %vm315_vm3, %v712_v3 }
 0x44f   :  { %v2879_v4 = vpop.f32.mrf.mxu0 }
 0x450   :  { %v396_v5 = vadd.f32 %v2879_v4, %v3405_v36 }
 0x451   :  { %v390_v6 = vpop.f32.mrf.mxu0 }
 0x452   :  { %v391_v7 = vadd.f32 %v390_v6, %v3407_v38  ;;  %v403_v8 = vsel %vm399_vm8, %v396_v5, -inf }
 0x453   :  { %404 = vmax.xlane.f32.xlu1 %v403_v8 }
 0x454   :  { %v400_v9 = vsel %vm399_vm8, %v391_v7, -inf }
 0x455   :  { %401 = vmax.xlane.f32.xlu0 %v400_v9 }
 0x4dc   :  { %v405_v14 = vpop.xlane.xlu1 %404 }
 0x4dd   :  { %v407_v19 = vsub.f32 %v396_v5, %v405_v14 }
 0x4de   :  { %v402_v10 = vpop.xlane.xlu0 %401 }
 0x4df   :  { %v406_v11 = vsub.f32 %v391_v7, %v402_v10  ;;  %v410_v23 = vmul.f32 1.442695, %v407_v19 }
 0x4e1   :  { %v408_v12 = vmul.f32 1.442695, %v406_v11 }
 0x4e3   :  { %3082 = vpow2.f32 %v408_v12 }
 0x4e4   :  { %3084 = vpow2.f32 %v410_v23 }
 0x4f0   :  { %v3083_v15 = vpop.eup %3082 }
 0x4f1   :  { %v412_v16 = vsel %vm399_vm8, %v3083_v15, 0.0  ;;  %v3085_v37 = vpop.eup %3084 }
 0x4f2   :  { %413 = vadd.xlane.f32.xlu1 %v412_v16  ;;  %v415_v39 = vsel %vm399_vm8, %v3085_v37, 0.0 }
 0x4f5   :  { %v3450_v24 = vpop.f32.mrf.mxu0 }
 0x4f7   :  { %v3452_v27 = vpop.f32.mrf.mxu0 }
 0x4fd   :  { %v2907_v29 = vpop.f32.mrf.mxu0 }
 0x4fe   :  { %v797_v32 = vadd.f32 %v2907_v29, %v3405_v36 }
 0x4ff   :  { %v791_v30 = vpop.f32.mrf.mxu0 }
 0x500   :  { %v792_v31 = vadd.f32 %v791_v30, %v3407_v38  ;;  %v803_v35 = vsel %vm399_vm8, %v797_v32, -inf }
 0x502   :  { %v800_v33 = vsel %vm399_vm8, %v792_v31, -inf }
 0x503   :  { %801 = vmax.xlane.f32.xlu0 %v800_v33  ;;  %624 = vrot.lane.b32.xlu1 %v3389_v28, %s3254_s4 }
 0x507   :  { %804 = vmax.xlane.f32.xlu0 %v803_v35  ;;  %911 = vrot.lane.b32.xlu1 %v3389_v28, %s3255_s17 }
 0x50b   :  { %416 = vadd.xlane.f32.xlu0 %v415_v39  ;;  %909 = vrot.lane.b32.xlu1 %v3381_v25, %s3255_s17 }
 0x57b   :  { %v414_v40 = vpop.xlane.xlu1 %413 }
 0x57c   :  { %3086 = vrcp.f32 %v414_v40 }
 0x57f   :  { %v625_v41 = vpop.permute.xlu1 %624 }
 0x580   :  { %2894 = vmatprep.subr.mxu1 %v625_v41 }
 0x581   :  { %2895 = vmatpush3.msra.mxu1 %v625_v41 }
 0x583   :  { %v912_v54 = vpop.permute.xlu1 %911 }
 0x587   :  { %v910_v56 = vpop.permute.xlu1 %909 }
 0x589   :  { %v3087_v42 = vpop.eup %3086 }
 0x58a   :  { %v420_v43 = vmul.f32 %v3087_v42, %v3083_v15 }
 0x58c   :  { %v802_v44 = vpop.xlane.xlu0 %801  ;;  %2898 = vmatprep.mubr.msk.f32.mxu1 %vm399_vm8, %v420_v43 }
 0x58d   :  { %v806_v45 = vsub.f32 %v792_v31, %v802_v44 }
 0x58f   :  { %v808_v46 = vmul.f32 1.442695, %v806_v45 }
 0x590   :  { %v805_v47 = vpop.xlane.xlu0 %804 }
 0x591   :  { %3088 = vpow2.f32 %v808_v46  ;;  %v807_v48 = vsub.f32 %v797_v32, %v805_v47  ;;  %v3505_v47 = vld [vmem:[%s3839_s7] sm:$0x7f] }
 0x593   :  { %v810_v49 = vmul.f32 1.442695, %v807_v48 }
 0x594   :  { %v417_v55 = vpop.xlane.xlu0 %416 }
 0x595   :  { %3090 = vpow2.f32 %v810_v49 }
 0x596   :  { %3092 = vrcp.f32 %v417_v55 }
 0x59e   :  { %v3089_v50 = vpop.eup %3088 }
 0x59f   :  { %v812_v51 = vsel %vm399_vm8, %v3089_v50, 0.0 }
 0x5a0   :  { %813 = vadd.xlane.f32.xlu1 %v812_v51 }
 0x5a2   :  { %v3091_v52 = vpop.eup %3090 }
 0x5a3   :  { %v815_v53 = vsel %vm399_vm8, %v3091_v52, 0.0  ;;  %v3093_v60 = vpop.eup %3092 }
 0x5a4   :  { %816 = vadd.xlane.f32.xlu0 %v815_v53 }
 0x5b1   :  { %907 = vrot.lane.b32.xlu1 %v3389_v28, %s3256_s18  ;;  %v222_v28 = vrot.slane %v3377_v22, %v3475_v58 }
 0x5b3   :  { %v307_v62 = vadd.f32 %v3403_v34, %v222_v28  ;;  %v301_v63 = vadd.f32 %v3383_v26, %v222_v28 }
 0x5ba   :  { %622 = vrot.lane.b32.xlu0 %v3381_v25, %s3254_s4 }
 0x5be   :  { %905 = vrot.lane.b32.xlu0 %v3381_v25, %s3256_s18  ;;  %v421_v25 = vmul.f32 %v3093_v60, %v3085_v37 }
 0x629   :  { %v814_v57 = vpop.xlane.xlu1 %813 }
 0x62a   :  { %3094 = vrcp.f32 %v814_v57 }
 0x62d   :  { %v817_v59 = vpop.xlane.xlu0 %816  ;;  %v908_v26 = vpop.permute.xlu1 %907 }
 0x62e   :  { %3096 = vrcp.f32 %v817_v59 }
 0x631   :  { %v623_v61 = vpop.permute.xlu0 %622 }
 0x632   :  { %2896 = vmatprep.subr.mxu1 %v623_v61 }
 0x633   :  { %2897 = vmatpush3.msra.mxu1 %v623_v61 }
 0x634   :  { %2899 = vmatmul.mubr.msk.f32.vlgmr.msra.gmra.mxu1 %vm399_vm8, %v421_v25  ;;  %2908 = vmatprep.subr.mxu1 %v307_v62 }
 0x635   :  { %2909 = vmatpush3.msra.mxu1 %v307_v62  ;;  %v906_v34 = vpop.permute.xlu0 %905 }
 0x636   :  { %2910 = vmatprep.subr.mxu1 %v301_v63 }
 0x637   :  { %v3095_v0 = vpop.eup %3094  ;;  %2911 = vmatpush3.msra.mxu1 %v301_v63 }
 0x638   :  { %2915 = vmatprep.subr.msk.mxu1 %vm315_vm3, %v912_v54  ;;  %v820_v1 = vmul.f32 %v3095_v0, %v3089_v50  ;;  %v1114_v50 = vrot.slane %v3505_v47, %v3375_v21 }
 0x63a   :  { %2912 = vmatprep.mubr.msk.f32.mxu1 %vm399_vm8, %v820_v1 }
 0x63b   :  { %v3097_v22 = vpop.eup %3096 }
 0x63c   :  { %v821_v2 = vmul.f32 %v3097_v22, %v3091_v52  ;;  %v1158_v22 = vld [vmem:[%s3837_s5 + $0x18] sm:$0xff] }
 0x63e   :  { %2913 = vmatmul.mubr.msk.f32.vlgmr.msra.gmra.mxu1 %vm399_vm8, %v821_v2  ;;  %v1157_v2 = vld [vmem:[%s3837_s5 + $0x10] sm:$0xff] }
 0x63f   :  { %2916 = vmatpush3.xpose.msk.msra.mxu1 %vm315_vm3, %v912_v54  ;;  %2919 = vmatprep.mubr.msk.f32.mxu1 %vm315_vm3, %v906_v34  ;;  %v1156_v34 = vld [vmem:[%s3837_s5 + $0x8] sm:$0xff] }
 0x640   :  { %2917 = vmatprep.subr.msk.mxu1 %vm315_vm3, %v910_v56 }
 0x643   :  { %2918 = vmatpush3.xpose.msk.msra.mxu1 %vm315_vm3, %v910_v56 }
 0x646   :  { %2920 = vmatmul.mubr.msk.f32.vlgmr.msra.gmra.mxu1 %vm315_vm3, %v908_v26  ;;  %v1155_v26 = vld [vmem:[%s3837_s5] sm:$0xff] }
 0x6f4   :  { %v2900_v3 = vpop.f32.mrf.mxu1 }
 0x6f5   :  { %v706_v5 = vadd.f32 %v2900_v3, %v3450_v24  ;;  %v1253_v3 = vld [vmem:[%s3838_s6 + $0x38] sm:$0xff] }
 0x6f6   :  { %v700_v4 = vpop.f32.mrf.mxu1  ;;  %2940 = vmatprep.subr.mxu1 %v1253_v3 }
 0x6f7   :  { %v701_v7 = vadd.f32 %v700_v4, %v3452_v27  ;;  %v1252_v4 = vld [vmem:[%s3838_s6 + $0x30] sm:$0xff]  ;;  %2941 = vmatpush3.msra.mxu1 %v1253_v3  ;;  %v2707_v3 = vld [vmem:[%s3835_s3 + $0x58] sm:$0xff] }
 0x6f8   :  { %2942 = vmatprep.subr.mxu1 %v1252_v4 }
 0x6f9   :  { %2943 = vmatpush3.msra.mxu1 %v1252_v4  ;;  %v2706_v4 = vld [vmem:[%s3835_s3 + $0x50] sm:$0xff] }
 0x6fe   :  { %v2914_v6 = vpop.f32.mrf.mxu1 }
 0x6ff   :  { %v904_v8 = vadd.f32 %v2914_v6, %v706_v5  ;;  %v1251_v5 = vld [vmem:[%s3838_s6 + $0x28] sm:$0xff]  ;;  %v1250_v6 = vld [vmem:[%s3838_s6 + $0x20] sm:$0xff] }
 0x700   :  { %v894_v9 = vpop.f32.mrf.mxu1  ;;  %2944 = vmatprep.subr.mxu1 %v1251_v5 }
 0x701   :  { %v903_v10 = vadd.f32 %v894_v9, %v701_v7  ;;  %2945 = vmatpush3.msra.mxu1 %v1251_v5  ;;  %v2705_v5 = vld [vmem:[%s3835_s3 + $0x48] sm:$0xff] }
 0x702   :  { %2946 = vmatprep.subr.mxu1 %v1250_v6 }
 0x703   :  { %2947 = vmatpush3.msra.mxu1 %v1250_v6  ;;  %v2704_v6 = vld [vmem:[%s3835_s3 + $0x40] sm:$0xff] }
 0x706   :  { %v2921_v11 = vpop.f32.mrf.mxu1 }
 0x707   :  { %v993_v12 = vadd.f32 %v2921_v11, %v3405_v36 }
 0x708   :  { %v987_v14 = vpop.f32.mrf.mxu1 }
 0x709   :  { %v988_v15 = vadd.f32 %v987_v14, %v3407_v38  ;;  %v999_v16 = vsel %vm399_vm8, %v993_v12, -inf }
 0x70a   :  { %1000 = vmax.xlane.f32.xlu1 %v999_v16  ;;  %v1151_v16 = vsub.s32 2, %v3372_v20 }
 0x70b   :  { %v996_v19 = vsel %vm399_vm8, %v988_v15, -inf }
 0x70c   :  { %997 = vmax.xlane.f32.xlu0 %v996_v19 }
 0x71b   :  { %1022 = vrot.lane.b32.xlu1 %v307_v62, %s3251_s14 }
 0x793   :  { %v1001_v23 = vpop.xlane.xlu1 %1000 }
 0x794   :  { %v1003_v24 = vsub.f32 %v993_v12, %v1001_v23 }
 0x795   :  { %v998_v27 = vpop.xlane.xlu0 %997 }
 0x796   :  { %v1006_v29 = vmul.f32 1.442695, %v1003_v24  ;;  %v1002_v30 = vsub.f32 %v988_v15, %v998_v27  ;;  %v1146_v15 = vrot.slane %v3505_v47, %v3475_v58 }
 0x797   :  { %v1023_v31 = vpop.permute.xlu1 %1022 }
 0x798   :  { %3098 = vpow2.f32 %v1006_v29  ;;  %v1004_v32 = vmul.f32 1.442695, %v1002_v30  ;;  %2922 = vmatprep.subr.mxu0 %v1023_v31  ;;  %v1152_v29 = vrot.slane %v3505_v47, %v1151_v16 }
 0x799   :  { %2923 = vmatpush3.msra.mxu0 %v1023_v31 }
 0x79a   :  { %3100 = vpow2.f32 %v1004_v32 }
 0x7a5   :  { %v3099_v33 = vpop.eup %3098 }
 0x7a6   :  { %v1011_v35 = vsel %vm399_vm8, %v3099_v33, 0.0 }
 0x7a7   :  { %v3101_v37 = vpop.eup %3100  ;;  %1012 = vadd.xlane.f32.xlu0 %v1011_v35  ;;  %v1248_v35 = vld [vmem:[%s3838_s6 + $0x10] sm:$0xff] }
 0x7a8   :  { %v1008_v39 = vsel %vm399_vm8, %v3101_v37, 0.0 }
 0x7ab   :  { %1009 = vadd.xlane.f32.xlu0 %v1008_v39  ;;  %v1246_v39 = vld [vmem:[%s3838_s6] sm:$0xff] }
 0x7c1   :  { %1020 = vrot.lane.b32.xlu0 %v301_v63, %s3251_s14 }
 0x830   :  { %v1013_v40 = vpop.xlane.xlu0 %1012 }
 0x831   :  { %3102 = vrcp.f32 %v1013_v40  ;;  %v1161_v40 = vsub.s32 6, %v3372_v20 }
 0x834   :  { %v1010_v41 = vpop.xlane.xlu0 %1009 }
 0x835   :  { %3104 = vrcp.f32 %v1010_v41  ;;  %v1162_v41 = vrot.slane %v3505_v47, %v1161_v40 }
 0x838   :  { %v1021_v42 = vpop.permute.xlu0 %1020 }
 0x839   :  { %2924 = vmatprep.subr.mxu0 %v1021_v42 }
 0x83a   :  { %2925 = vmatpush3.msra.mxu0 %v1021_v42 }
 0x83b   :  { %2929 = vmatprep.subr.mxu0 %v1158_v22 }
 0x83e   :  { %v3103_v43 = vpop.eup %3102 }
 0x83f   :  { %v1017_v46 = vmul.f32 %v3103_v43, %v3099_v33  ;;  %v1249_v33 = vld [vmem:[%s3838_s6 + $0x18] sm:$0xff] }
 0x840   :  { %2948 = vmatprep.subr.mxu1 %v1249_v33 }
 0x841   :  { %2949 = vmatpush3.msra.mxu1 %v1249_v33 }
 0x842   :  { %v3105_v44 = vpop.eup %3104  ;;  %2950 = vmatprep.subr.mxu1 %v1248_v35 }
 0x843   :  { %v1016_v45 = vmul.f32 %v3105_v44, %v3101_v37  ;;  %2951 = vmatpush3.msra.mxu1 %v1248_v35  ;;  %v1247_v37 = vld [vmem:[%s3838_s6 + $0x8] sm:$0xff] }
 0x844   :  { %2952 = vmatprep.subr.mxu1 %v1247_v37 }
 0x845   :  { %2926 = vmatprep.mubr.msk.f32.mxu0 %vm399_vm8, %v1016_v45  ;;  %2953 = vmatpush3.msra.mxu1 %v1247_v37  ;;  %v3615_v37 = vld [vmem:[#allocation7 + $0x2] sm:$0x3] }
 0x846   :  { %2927 = vmatmul.mubr.msk.f32.vlgmr.msra.gmra.mxu0 %vm399_vm8, %v1017_v46  ;;  %2954 = vmatprep.subr.mxu1 %v1246_v39 }
 0x847   :  { %2930 = vmatpush3.msra.mxu0 %v1158_v22  ;;  %2955 = vmatpush3.msra.mxu1 %v1246_v39  ;;  %v2711_v22 = vld [vmem:[%s3835_s3 + $0x78] sm:$0xff]  ;;  %v1397_v39 = vrot.slane %v3615_v37, %v3375_v21 }
 0x848   :  { %2931 = vmatprep.subr.mxu0 %v1157_v2 }
 0x849   :  { %2932 = vmatpush3.msra.mxu0 %v1157_v2  ;;  %v2710_v2 = vld [vmem:[%s3835_s3 + $0x70] sm:$0xff] }
 0x84a   :  { %2933 = vmatprep.subr.mxu0 %v1156_v34 }
 0x84b   :  { %2934 = vmatpush3.msra.mxu0 %v1156_v34  ;;  %v2709_v34 = vld [vmem:[%s3835_s3 + $0x68] sm:$0xff] }
 0x84c   :  { %2935 = vmatprep.subr.mxu0 %v1155_v26 }
 0x84d   :  { %2936 = vmatpush3.msra.mxu0 %v1155_v26  ;;  %v2708_v26 = vld [vmem:[%s3835_s3 + $0x60] sm:$0xff] }
 0x84e   :  { %1434 = vmatprep.subr.mxu0 %v2711_v22 }
 0x906   :  { %v2928_v48 = vpop.f32.mrf.mxu0 }
 0x907   :  { %v1108_v49 = vadd.f32 %v2928_v48, %v904_v8 }
 0x908   :  { %v1098_v51 = vpop.f32.mrf.mxu0 }
 0x909   :  { %v1110_v52 = vadd.f32 %v1108_v49, %v3368_v18  ;;  %v1107_v53 = vadd.f32 %v1098_v51, %v903_v10  ;;  %v1256_v49 = vsub.s32 3, %v3372_v20 }
 0x90b   :  { %v1109_v54 = vadd.f32 %v1107_v53, %v3363_v17  ;;  %v1116_v55 = vadd.f32 %v1114_v50, %v1110_v52 }
 0x90d   :  { %v1120_v56 = vsel %vm225_vm2, %v1116_v55, 0.0  ;;  %v1115_v57 = vadd.f32 %v1114_v50, %v1109_v54  ;;  %v1257_v50 = vrot.slane %v3505_v47, %v1256_v49 }
 0x90e   :  { %1121 = vadd.xlane.f32.xlu0 %v1120_v56 }
 0x90f   :  { %v1117_v59 = vsel %vm225_vm2, %v1115_v57, 0.0 }
 0x910   :  { %1118 = vadd.xlane.f32.xlu1 %v1117_v59 }
 0x997   :  { %v1122_v60 = vpop.xlane.xlu0 %1121 }
 0x998   :  { %v1124_v28 = vmul.f32 0.03125, %v1122_v60 }
 0x999   :  { %v1119_v61 = vpop.xlane.xlu1 %1118 }
 0x99a   :  { %v1126_v62 = vsub.f32 %v1116_v55, %v1124_v28  ;;  %v1123_v25 = vmul.f32 0.03125, %v1119_v61 }
 0x99c   :  { %v1125_v63 = vsub.f32 %v1115_v57, %v1123_v25  ;;  %v1128_v0 = vmul.f32 %v1126_v62, %v1126_v62 }
 0x99e   :  { %v1132_v18 = vsel %vm225_vm2, %v1128_v0, 0.0  ;;  %v1127_v1 = vmul.f32 %v1125_v63, %v1125_v63 }
 0x99f   :  { %1133 = vadd.xlane.f32.xlu0 %v1132_v18 }
 0x9a0   :  { %v1129_v17 = vsel %vm225_vm2, %v1127_v1, 0.0 }
 0x9a1   :  { %1130 = vadd.xlane.f32.xlu1 %v1129_v17 }
 0xa28   :  { %v1134_v7 = vpop.xlane.xlu0 %1133 }
 0xa29   :  { %v1136_v8 = vmul.f32 0.03125, %v1134_v7 }
 0xa2a   :  { %v1131_v9 = vpop.xlane.xlu1 %1130 }
 0xa2b   :  { %v1138_v10 = vadd.f32 1e-05, %v1136_v8  ;;  %v1135_v11 = vmul.f32 0.03125, %v1131_v9 }
 0xa2d   :  { %3106 = vrsqrt.f32 %v1138_v10  ;;  %v1137_v12 = vadd.f32 1e-05, %v1135_v11 }
 0xa2f   :  { %3108 = vrsqrt.f32 %v1137_v12 }
 0xa3a   :  { %v3107_v14 = vpop.eup %3106 }
 0xa3b   :  { %v1142_v19 = vmul.f32 %v3107_v14, %v1126_v62  ;;  %v1370_v14 = vsub.s32 4, %v3372_v20 }
 0xa3c   :  { %v3109_v23 = vpop.eup %3108 }
 0xa3d   :  { %v1141_v24 = vmul.f32 %v3109_v23, %v1125_v63  ;;  %v1148_v27 = vmul.f32 %v1146_v15, %v1142_v19  ;;  %v1376_v19 = vsub.s32 5, %v3372_v20 }
 0xa3f   :  { %v1147_v30 = vmul.f32 %v1146_v15, %v1141_v24  ;;  %v1154_v32 = vadd.f32 %v1152_v29, %v1148_v27  ;;  %v1371_v27 = vrot.slane %v3505_v47, %v1370_v14 }
 0xa41   :  { %v1153_v31 = vadd.f32 %v1152_v29, %v1147_v30 }
 0xa43   :  { %2937 = vmatprep.mubr.msk.f32.mxu0 %vm225_vm2, %v1153_v31 }
 0xa44   :  { %2938 = vmatmul.mubr.msk.f32.vlgmr.msra.gmra.mxu0 %vm225_vm2, %v1154_v32 }
 0xa45   :  { %1474 = vmatprep.mubr.f32.mxu0 %v3247_v13  ;;  %1435 = vmatpush1.msra.mxu0 %v2710_v2 }
 0xa46   :  { %1436 = vmatprep.subr.mxu0 %v2709_v34 }
 0xa47   :  { %1437 = vmatpush1.msra.mxu0 %v2708_v26 }
 0xa48   :  { %1438 = vmatprep.subr.mxu0 %v2707_v3 }
 0xa49   :  { %1439 = vmatpush1.msra.mxu0 %v2706_v4 }
 0xa4a   :  { %1440 = vmatprep.subr.mxu0 %v2705_v5 }
 0xa4b   :  { %1441 = vmatpush1.msra.mxu0 %v2704_v6 }
 0xb04   :  { %v2939_v42 = vpop.f32.mrf.mxu0 }
 0xb05   :  { %v1241_v43 = vadd.f32 %v2939_v42, %v1162_v41 }
 0xb06   :  { %v1235_v44 = vpop.f32.mrf.mxu0 }
 0xb07   :  { %v1236_v45 = vadd.f32 %v1235_v44, %v1162_v41  ;;  %v1245_v48 = vmax.f32 %v1241_v43, 0.0 }
 0xb09   :  { %v1244_v46 = vmax.f32 %v1236_v45, 0.0 }
 0xb0b   :  { %2956 = vmatprep.mubr.msk.f32.mxu1 %vm1258_vm9, %v1244_v46 }
 0xb0c   :  { %2957 = vmatmul.mubr.msk.f32.vlgmr.msra.gmra.mxu1 %vm1258_vm9, %v1245_v48 }
 0xbcc   :  { %v2958_v51 = vpop.f32.mrf.mxu1 }
 0xbcd   :  { %v1337_v52 = vadd.f32 %v2958_v51, %v1257_v50 }
 0xbce   :  { %v1331_v53 = vpop.f32.mrf.mxu1 }
 0xbcf   :  { %v1332_v54 = vadd.f32 %v1331_v53, %v1257_v50  ;;  %v1341_v55 = vadd.f32 %v1337_v52, %v1154_v32 }
 0xbd1   :  { %v1345_v56 = vsel %vm225_vm2, %v1341_v55, 0.0  ;;  %v1340_v57 = vadd.f32 %v1332_v54, %v1153_v31  ;;  %v1377_v31 = vrot.slane %v3505_v47, %v1376_v19 }
 0xbd2   :  { %1346 = vadd.xlane.f32.xlu0 %v1345_v56 }
 0xbd3   :  { %v1342_v59 = vsel %vm225_vm2, %v1340_v57, 0.0 }
 0xbd4   :  { %1343 = vadd.xlane.f32.xlu1 %v1342_v59 }
 0xc5b   :  { %v1347_v60 = vpop.xlane.xlu0 %1346 }
 0xc5c   :  { %v1349_v28 = vmul.f32 0.03125, %v1347_v60 }
 0xc5d   :  { %v1344_v61 = vpop.xlane.xlu1 %1343 }
 0xc5e   :  { %v1351_v62 = vsub.f32 %v1341_v55, %v1349_v28  ;;  %v1348_v25 = vmul.f32 0.03125, %v1344_v61 }
 0xc60   :  { %v1350_v63 = vsub.f32 %v1340_v57, %v1348_v25  ;;  %v1353_v0 = vmul.f32 %v1351_v62, %v1351_v62 }
 0xc62   :  { %v1357_v18 = vsel %vm225_vm2, %v1353_v0, 0.0  ;;  %v1352_v1 = vmul.f32 %v1350_v63, %v1350_v63 }
 0xc63   :  { %1358 = vadd.xlane.f32.xlu0 %v1357_v18 }
 0xc64   :  { %v1354_v17 = vsel %vm225_vm2, %v1352_v1, 0.0 }
 0xc65   :  { %1355 = vadd.xlane.f32.xlu1 %v1354_v17 }
 0xcec   :  { %v1359_v7 = vpop.xlane.xlu0 %1358 }
 0xced   :  { %v1361_v8 = vmul.f32 0.03125, %v1359_v7 }
 0xcee   :  { %v1356_v9 = vpop.xlane.xlu1 %1355 }
 0xcef   :  { %v1363_v10 = vadd.f32 1e-05, %v1361_v8  ;;  %v1360_v11 = vmul.f32 0.03125, %v1356_v9 }
 0xcf1   :  { %3110 = vrsqrt.f32 %v1363_v10  ;;  %v1362_v12 = vadd.f32 1e-05, %v1360_v11 }
 0xcf3   :  { %3112 = vrsqrt.f32 %v1362_v12 }
 0xcfe   :  { %v3111_v15 = vpop.eup %3110 }
 0xcff   :  { %v1367_v29 = vmul.f32 %v3111_v15, %v1351_v62 }
 0xd00   :  { %v3113_v23 = vpop.eup %3112 }
 0xd01   :  { %v1366_v24 = vmul.f32 %v3113_v23, %v1350_v63  ;;  %v1373_v33 = vmul.f32 %v1371_v27, %v1367_v29 }
 0xd03   :  { %v1372_v30 = vmul.f32 %v1371_v27, %v1366_v24  ;;  %v3611_v35 = vadd.f32 %v1377_v31, %v1373_v33 }
 0xd05   :  { %v3606_v32 = vadd.f32 %v1377_v31, %v1372_v30 }
 0xd07   :  { %2712 = vmatmul.mubr.msk.f32.vlgmr.msra.gmra.mxu0 %vm225_vm2, %v3606_v32 }
 0xd08   :  { %1480 = vmatprep.mubr.f32.mxu0 %v3247_v13 }
 0xd0b   :  { %2713 = vmatmul.mubr.msk.f32.gmra.mxu0 %vm225_vm2, %v3611_v35 }
 0xdc7   :  { %v1476_v41 = vpop.f32.mrf.mxu0 }
 0xdc8   :  { %v3619_v47 = vadd.f32 %v1476_v41, %v1397_v39 }
 0xdc9   :  { %v3621_v42 = vpop.f32.mrf.mxu0 }
 0xdca   :  { %1602 = vrot.lane.b32.xlu0 %v3619_v47, %s3249_s13  ;;  %2963 = vmatprep.mubr.msk.f32.mxu0 %vm315_vm3, %v3619_v47 }
 0xdcb   :  { %v1482_v13 = vpop.f32.mrf.mxu0 }
 0xdcc   :  { %v3627_v43 = vadd.f32 %v1482_v13, %v1397_v39 }
 0xdcd   :  { %v3677_v10 = vpop.f32.mrf.mxu0 }
 0xdce   :  { %1604 = vrot.lane.b32.xlu1 %v3627_v43, %s3249_s13 }
 0xdd2   :  { %1598 = vrot.lane.b32.xlu1 %v3619_v47, %s3248_s12 }
 0xdd6   :  { %1600 = vrot.lane.b32.xlu1 %v3627_v43, %s3248_s12 }
 0xe3c   :  { %v1603_v45 = vpop.permute.xlu0 %1602 }
 0xe40   :  { %v1605_v44 = vpop.permute.xlu1 %1604 }
 0xe41   :  { %2966 = vmatprep.subr.msk.mxu1 %vm315_vm3, %v1605_v44 }
 0xe42   :  { %2967 = vmatpush3.xpose.msk.msra.mxu1 %vm315_vm3, %v1605_v44 }
 0xe43   :  { %2968 = vmatprep.subr.msk.mxu1 %vm315_vm3, %v1603_v45 }
 0xe44   :  { %v1599_v46 = vpop.permute.xlu1 %1598 }
 0xe45   :  { %2970 = vmatprep.mubr.msk.f32.mxu1 %vm315_vm3, %v1599_v46 }
 0xe46   :  { %2969 = vmatpush3.xpose.msk.msra.mxu1 %vm315_vm3, %v1603_v45 }
 0xe48   :  { %v1601_v48 = vpop.permute.xlu1 %1600 }
 0xe49   :  { %2971 = vmatmul.mubr.msk.f32.vlgmr.msra.gmra.mxu1 %vm315_vm3, %v1601_v48 }
 0xf09   :  { %v2972_v50 = vpop.f32.mrf.mxu1 }
 0xf0a   :  { %v1686_v51 = vadd.f32 %v2972_v50, %v3405_v36 }
 0xf0b   :  { %v1680_v52 = vpop.f32.mrf.mxu1 }
 0xf0c   :  { %v1681_v53 = vadd.f32 %v1680_v52, %v3407_v38  ;;  %v1692_v54 = vsel %vm399_vm8, %v1686_v51, -inf }
 0xf0d   :  { %1693 = vmax.xlane.f32.xlu1 %v1692_v54 }
 0xf0e   :  { %v1689_v55 = vsel %vm399_vm8, %v1681_v53, -inf }
 0xf0f   :  { %1690 = vmax.xlane.f32.xlu0 %v1689_v55 }
 0xf1e   :  { %1491 = vrot.lane.b32.xlu1 %v3627_v43, %s3251_s14 }
 0xf22   :  { %1713 = vrot.lane.b32.xlu1 %v3627_v43, %s3245_s28 }
 0xf25   :  { %1489 = vrot.lane.b32.xlu0 %v3619_v47, %s3251_s14 }
 0xf26   :  { %1711 = vrot.lane.b32.xlu1 %v3619_v47, %s3245_s28 }
 0xf2a   :  { %1889 = vrot.lane.b32.xlu1 %v3619_v47, %s3252_s15 }
 0xf2e   :  { %1887 = vrot.lane.b32.xlu1 %v3627_v43, %s3253_s16 }
 0xf96   :  { %v1694_v56 = vpop.xlane.xlu1 %1693 }
 0xf97   :  { %v1696_v57 = vsub.f32 %v1686_v51, %v1694_v56 }
 0xf98   :  { %v1691_v59 = vpop.xlane.xlu0 %1690 }
 0xf99   :  { %v1699_v60 = vmul.f32 1.442695, %v1696_v57  ;;  %v1695_v28 = vsub.f32 %v1681_v53, %v1691_v59 }
 0xf9a   :  { %v1492_v61 = vpop.permute.xlu1 %1491 }
 0xf9b   :  { %3114 = vpow2.f32 %v1699_v60  ;;  %v1697_v62 = vmul.f32 1.442695, %v1695_v28  ;;  %2959 = vmatprep.subr.msk.mxu0 %vm315_vm3, %v1492_v61 }
 0xf9c   :  { %2960 = vmatpush3.xpose.msk.msra.mxu0 %vm315_vm3, %v1492_v61  ;;  %v1490_v25 = vpop.permute.xlu0 %1489 }
 0xf9d   :  { %3116 = vpow2.f32 %v1697_v62  ;;  %2961 = vmatprep.subr.msk.mxu0 %vm315_vm3, %v1490_v25 }
 0xf9e   :  { %v1714_v63 = vpop.permute.xlu1 %1713 }
 0xfa0   :  { %2962 = vmatpush3.xpose.msk.msra.mxu0 %vm315_vm3, %v1490_v25 }
 0xfa1   :  { %2973 = vmatprep.subr.mxu0 %v1714_v63 }
 0xfa2   :  { %v1712_v0 = vpop.permute.xlu1 %1711 }
 0xfa3   :  { %2964 = vmatmul.mubr.msk.f32.vlgmr.msra.gmra.mxu0 %vm315_vm3, %v3627_v43 }
 0xfa4   :  { %2974 = vmatpush3.msra.mxu0 %v1714_v63 }
 0xfa5   :  { %2975 = vmatprep.subr.mxu0 %v1712_v0 }
 0xfa6   :  { %2976 = vmatpush3.msra.mxu0 %v1712_v0  ;;  %v1890_v8 = vpop.permute.xlu1 %1889 }
 0xfa8   :  { %v3115_v18 = vpop.eup %3114 }
 0xfa9   :  { %v1704_v1 = vsel %vm399_vm8, %v3115_v18, 0.0 }
 0xfaa   :  { %v3117_v17 = vpop.eup %3116  ;;  %1705 = vadd.xlane.f32.xlu0 %v1704_v1  ;;  %v1888_v9 = vpop.permute.xlu1 %1887 }
 0xfab   :  { %v1701_v22 = vsel %vm399_vm8, %v3117_v17, 0.0 }
 0xfae   :  { %1702 = vadd.xlane.f32.xlu0 %v1701_v22 }
 0xfc4   :  { %1891 = vrot.lane.b32.xlu0 %v3627_v43, %s3252_s15 }
 0xfc8   :  { %1885 = vrot.lane.b32.xlu0 %v3619_v47, %s3253_s16 }
0x1033   :  { %v1706_v2 = vpop.xlane.xlu0 %1705 }
0x1034   :  { %3118 = vrcp.f32 %v1706_v2 }
0x1037   :  { %v1703_v34 = vpop.xlane.xlu0 %1702 }
0x1038   :  { %3120 = vrcp.f32 %v1703_v34 }
0x103b   :  { %v1892_v26 = vpop.permute.xlu0 %1891 }
0x103c   :  { %2987 = vmatprep.subr.msk.mxu0 %vm315_vm3, %v1892_v26 }
0x103f   :  { %v1886_v7 = vpop.permute.xlu0 %1885 }
0x1041   :  { %v3119_v3 = vpop.eup %3118 }
0x1042   :  { %v1710_v6 = vmul.f32 %v3119_v3, %v3115_v18 }
0x1045   :  { %v3121_v4 = vpop.eup %3120 }
0x1046   :  { %v1709_v5 = vmul.f32 %v3121_v4, %v3117_v17 }
0x1048   :  { %2977 = vmatprep.mubr.msk.f32.mxu0 %vm399_vm8, %v1709_v5 }
0x1049   :  { %2978 = vmatmul.mubr.msk.f32.vlgmr.msra.gmra.mxu0 %vm399_vm8, %v1710_v6 }
0x104a   :  { %2988 = vmatpush3.xpose.msk.msra.mxu0 %vm315_vm3, %v1892_v26  ;;  %2991 = vmatprep.mubr.msk.f32.mxu0 %vm315_vm3, %v1886_v7  ;;  %v1401_v7 = vrot.slane %v3615_v37, %v3475_v58 }
0x104b   :  { %2989 = vmatprep.subr.msk.mxu0 %vm315_vm3, %v1890_v8 }
0x104e   :  { %2990 = vmatpush3.xpose.msk.msra.mxu0 %vm315_vm3, %v1890_v8 }
0x1051   :  { %2992 = vmatmul.mubr.msk.f32.vlgmr.msra.gmra.mxu0 %vm315_vm3, %v1888_v9 }
0x1063   :  { %v2965_v11 = vpop.f32.mrf.mxu0 }
0x1064   :  { %v1573_v12 = vadd.f32 %v2965_v11, %v3405_v36 }
0x1065   :  { %v1567_v15 = vpop.f32.mrf.mxu0 }
0x1066   :  { %v1568_v23 = vadd.f32 %v1567_v15, %v3407_v38  ;;  %v1579_v24 = vsel %vm399_vm8, %v1573_v12, -inf }
0x1067   :  { %1580 = vmax.xlane.f32.xlu1 %v1579_v24 }
0x1068   :  { %v1576_v27 = vsel %vm399_vm8, %v1568_v23, -inf }
0x1069   :  { %1577 = vmax.xlane.f32.xlu0 %v1576_v27 }
0x10f0   :  { %v1581_v33 = vpop.xlane.xlu1 %1580 }
0x10f1   :  { %v1583_v13 = vsub.f32 %v1573_v12, %v1581_v33 }
0x10f2   :  { %v1578_v29 = vpop.xlane.xlu0 %1577 }
0x10f3   :  { %v1582_v30 = vsub.f32 %v1568_v23, %v1578_v29  ;;  %v1586_v44 = vmul.f32 1.442695, %v1583_v13 }
0x10f5   :  { %v1584_v31 = vmul.f32 1.442695, %v1582_v30 }
0x10f7   :  { %3122 = vpow2.f32 %v1584_v31 }
0x10f8   :  { %3124 = vpow2.f32 %v1586_v44 }
0x1104   :  { %v3123_v39 = vpop.eup %3122 }
0x1105   :  { %v1588_v41 = vsel %vm399_vm8, %v3123_v39, 0.0  ;;  %v3125_v55 = vpop.eup %3124 }
0x1106   :  { %1589 = vadd.xlane.f32.xlu1 %v1588_v41  ;;  %v1591_v56 = vsel %vm399_vm8, %v3125_v55, 0.0 }
0x1109   :  { %v3684_v45 = vpop.f32.mrf.mxu0 }
0x110b   :  { %v3686_v46 = vpop.f32.mrf.mxu0 }
0x1111   :  { %v2993_v48 = vpop.f32.mrf.mxu0 }
0x1112   :  { %v1973_v52 = vadd.f32 %v2993_v48, %v3405_v36 }
0x1113   :  { %v1967_v50 = vpop.f32.mrf.mxu0 }
0x1114   :  { %v1968_v51 = vadd.f32 %v1967_v50, %v3407_v38  ;;  %v1979_v54 = vsel %vm399_vm8, %v1973_v52, -inf }
0x1116   :  { %v1976_v53 = vsel %vm399_vm8, %v1968_v51, -inf }
0x1117   :  { %1977 = vmax.xlane.f32.xlu0 %v1976_v53  ;;  %1800 = vrot.lane.b32.xlu1 %v3627_v43, %s3254_s4 }
0x111b   :  { %1980 = vmax.xlane.f32.xlu0 %v1979_v54  ;;  %2087 = vrot.lane.b32.xlu1 %v3627_v43, %s3255_s17 }
0x111f   :  { %1592 = vadd.xlane.f32.xlu0 %v1591_v56  ;;  %2085 = vrot.lane.b32.xlu1 %v3619_v47, %s3255_s17  ;;  %s3257_s17 = smov [#allocation8]  }
0x118f   :  { %v1590_v57 = vpop.xlane.xlu1 %1589 }
0x1190   :  { %3126 = vrcp.f32 %v1590_v57 }
0x1193   :  { %v1801_v59 = vpop.permute.xlu1 %1800 }
0x1194   :  { %2980 = vmatprep.subr.mxu1 %v1801_v59 }
0x1195   :  { %2981 = vmatpush3.msra.mxu1 %v1801_v59 }
0x1197   :  { %v2088_v34 = vpop.permute.xlu1 %2087 }
0x119b   :  { %v2086_v3 = vpop.permute.xlu1 %2085 }
0x119d   :  { %v3127_v60 = vpop.eup %3126 }
0x119e   :  { %v1596_v28 = vmul.f32 %v3127_v60, %v3123_v39 }
0x11a0   :  { %v1978_v61 = vpop.xlane.xlu0 %1977  ;;  %2984 = vmatprep.mubr.msk.f32.mxu1 %vm399_vm8, %v1596_v28 }
0x11a1   :  { %v1982_v62 = vsub.f32 %v1968_v51, %v1978_v61 }
0x11a3   :  { %v1984_v25 = vmul.f32 1.442695, %v1982_v62 }
0x11a4   :  { %v1981_v63 = vpop.xlane.xlu0 %1980 }
0x11a5   :  { %3128 = vpow2.f32 %v1984_v25  ;;  %v1983_v0 = vsub.f32 %v1973_v52, %v1981_v63 }
0x11a7   :  { %v1986_v18 = vmul.f32 1.442695, %v1983_v0 }
0x11a8   :  { %v1593_v26 = vpop.xlane.xlu0 %1592 }
0x11a9   :  { %3130 = vpow2.f32 %v1986_v18  ;;  %v3736_v18 = vld [vmem:[%s3839_s7 + $0x8] sm:$0x7f] }
0x11aa   :  { %3132 = vrcp.f32 %v1593_v26 }
0x11b2   :  { %v3129_v1 = vpop.eup %3128 }
0x11b3   :  { %v1988_v17 = vsel %vm399_vm8, %v3129_v1, 0.0 }
0x11b4   :  { %1989 = vadd.xlane.f32.xlu1 %v1988_v17 }
0x11b6   :  { %v3131_v22 = vpop.eup %3130 }
0x11b7   :  { %v1991_v2 = vsel %vm399_vm8, %v3131_v22, 0.0  ;;  %v3133_v6 = vpop.eup %3132 }
0x11b8   :  { %1992 = vadd.xlane.f32.xlu0 %v1991_v2  ;;  %v1597_v9 = vmul.f32 %v3133_v6, %v3125_v55 }
0x11c5   :  { %2083 = vrot.lane.b32.xlu1 %v3627_v43, %s3256_s18  ;;  %v1485_v43 = vadd.f32 %v3677_v10, %v1401_v7 }
0x11ce   :  { %1798 = vrot.lane.b32.xlu0 %v3619_v47, %s3254_s4 }
0x11d2   :  { %2081 = vrot.lane.b32.xlu0 %v3619_v47, %s3256_s18  ;;  %v1479_v47 = vadd.f32 %v3621_v42, %v1401_v7  ;;  %s2656_s18 = sshll.u32 %s3257_s17, 4  ;;  %s2657_s18 = int_to_ptr.vmem [resolvable:$true] %s2656_s18 }
0x11d3   :  { %s3214_s1 = scalar_lea.vmem %s2657_s18, 256  ;;  %p3219_p2 = scmp.lt.s32.totalorder %s2657_s18, %s2657_s18 }
0x11d4   :  { %p3215_p1 = scmp.ne.s32.totalorder %s2657_s18, %s3214_s1  ;;  %p3220_p3 = scmp.lt.s32.totalorder %s3214_s1, %s3214_s1 }
0x11d6   :  { %p3221_p4 = por %p3220_p3, %p3219_p2 }
0x11d8   :  { %p3222_p5 = pnand %p3221_p4, %p3215_p1 }
0x123d   :  { %v1990_v4 = vpop.xlane.xlu1 %1989 }
0x123e   :  { %3134 = vrcp.f32 %v1990_v4 }
0x1241   :  { %v1993_v5 = vpop.xlane.xlu0 %1992  ;;  %v2084_v42 = vpop.permute.xlu1 %2083 }
0x1242   :  { %3136 = vrcp.f32 %v1993_v5 }
0x1245   :  { %v1799_v8 = vpop.permute.xlu0 %1798 }
0x1246   :  { %2982 = vmatprep.subr.mxu1 %v1799_v8 }
0x1247   :  { %2983 = vmatpush3.msra.mxu1 %v1799_v8 }
0x1248   :  { %2985 = vmatmul.mubr.msk.f32.vlgmr.msra.gmra.mxu1 %vm399_vm8, %v1597_v9  ;;  %2994 = vmatprep.subr.mxu1 %v1485_v43 }
0x1249   :  { %2995 = vmatpush3.msra.mxu1 %v1485_v43  ;;  %v2082_v10 = vpop.permute.xlu0 %2081 }
0x124a   :  { %2996 = vmatprep.subr.mxu1 %v1479_v47 }
0x124b   :  { %v3135_v11 = vpop.eup %3134  ;;  %2997 = vmatpush3.msra.mxu1 %v1479_v47 }
0x124c   :  { %3001 = vmatprep.subr.msk.mxu1 %vm315_vm3, %v2088_v34  ;;  %v1996_v12 = vmul.f32 %v3135_v11, %v3129_v1 }
0x124e   :  { %2998 = vmatprep.mubr.msk.f32.mxu1 %vm399_vm8, %v1996_v12 }
0x124f   :  { %v3137_v37 = vpop.eup %3136 }
0x1250   :  { %v1997_v15 = vmul.f32 %v3137_v37, %v3131_v22  ;;  %v2290_v22 = vrot.slane %v3736_v18, %v3375_v21 }
0x1252   :  { %2999 = vmatmul.mubr.msk.f32.vlgmr.msra.gmra.mxu1 %vm399_vm8, %v1997_v15  ;;  %v2741_v15 = vld [vmem:[%s3837_s5 + $0x38] sm:$0xff] }
0x1253   :  { %3002 = vmatpush3.xpose.msk.msra.mxu1 %vm315_vm3, %v2088_v34  ;;  %3005 = vmatprep.mubr.msk.f32.mxu1 %vm315_vm3, %v2082_v10  ;;  %v2740_v10 = vld [vmem:[%s3837_s5 + $0x30] sm:$0xff] }
0x1254   :  { %3003 = vmatprep.subr.msk.mxu1 %vm315_vm3, %v2086_v3 }
0x1257   :  { %3004 = vmatpush3.xpose.msk.msra.mxu1 %vm315_vm3, %v2086_v3 }
0x125a   :  { %3006 = vmatmul.mubr.msk.f32.vlgmr.msra.gmra.mxu1 %vm315_vm3, %v2084_v42  ;;  %v2739_v42 = vld [vmem:[%s3837_s5 + $0x28] sm:$0xff] }
0x1308   :  { %v2986_v23 = vpop.f32.mrf.mxu1 }
0x1309   :  { %v1882_v27 = vadd.f32 %v2986_v23, %v3684_v45  ;;  %v2738_v23 = vld [vmem:[%s3837_s5 + $0x20] sm:$0xff] }
0x130a   :  { %v1876_v24 = vpop.f32.mrf.mxu1 }
0x130b   :  { %v1877_v30 = vadd.f32 %v1876_v24, %v3686_v46  ;;  %v2751_v24 = vld [vmem:[%s3838_s6 + $0x78] sm:$0xff] }
0x130c   :  { %3026 = vmatprep.subr.mxu1 %v2751_v24 }
0x130d   :  { %3027 = vmatpush3.msra.mxu1 %v2751_v24 }
0x1312   :  { %v3000_v29 = vpop.f32.mrf.mxu1 }
0x1313   :  { %v2080_v31 = vadd.f32 %v3000_v29, %v1882_v27  ;;  %v2750_v27 = vld [vmem:[%s3838_s6 + $0x70] sm:$0xff]  ;;  %v2749_v29 = vld [vmem:[%s3838_s6 + $0x68] sm:$0xff] }
0x1314   :  { %v2070_v33 = vpop.f32.mrf.mxu1  ;;  %3028 = vmatprep.subr.mxu1 %v2750_v27 }
0x1315   :  { %v2079_v39 = vadd.f32 %v2070_v33, %v1877_v30  ;;  %3029 = vmatpush3.msra.mxu1 %v2750_v27  ;;  %v2748_v30 = vld [vmem:[%s3838_s6 + $0x60] sm:$0xff]  ;;  %v2548_v27 = vrot.slane %v3736_v18, %v1370_v14 }
0x1316   :  { %3030 = vmatprep.subr.mxu1 %v2749_v29 }
0x1317   :  { %3031 = vmatpush3.msra.mxu1 %v2749_v29 }
0x1318   :  { %3032 = vmatprep.subr.mxu1 %v2748_v30 }
0x1319   :  { %3033 = vmatpush3.msra.mxu1 %v2748_v30 }
0x131a   :  { %v3007_v41 = vpop.f32.mrf.mxu1 }
0x131b   :  { %v2169_v13 = vadd.f32 %v3007_v41, %v3405_v36 }
0x131c   :  { %v2163_v44 = vpop.f32.mrf.mxu1 }
0x131d   :  { %v2164_v48 = vadd.f32 %v2163_v44, %v3407_v38  ;;  %v2175_v50 = vsel %vm399_vm8, %v2169_v13, -inf }
0x131e   :  { %2176 = vmax.xlane.f32.xlu1 %v2175_v50  ;;  %v2322_v50 = vrot.slane %v3736_v18, %v3475_v58  ;;  %v2746_v58 = vld [vmem:[%s3838_s6 + $0x50] sm:$0xff] }
0x131f   :  { %v2172_v51 = vsel %vm399_vm8, %v2164_v48, -inf }
0x1320   :  { %2173 = vmax.xlane.f32.xlu0 %v2172_v51 }
0x132f   :  { %2198 = vrot.lane.b32.xlu1 %v1485_v43, %s3251_s14 }
0x13a7   :  { %v2177_v45 = vpop.xlane.xlu1 %2176 }
0x13a8   :  { %v2179_v52 = vsub.f32 %v2169_v13, %v2177_v45 }
0x13a9   :  { %v2174_v46 = vpop.xlane.xlu0 %2173 }
0x13aa   :  { %v2182_v53 = vmul.f32 1.442695, %v2179_v52  ;;  %v2178_v54 = vsub.f32 %v2164_v48, %v2174_v46 }
0x13ab   :  { %v2199_v55 = vpop.permute.xlu1 %2198 }
0x13ac   :  { %3138 = vpow2.f32 %v2182_v53  ;;  %v2180_v56 = vmul.f32 1.442695, %v2178_v54  ;;  %3008 = vmatprep.subr.mxu0 %v2199_v55  ;;  %v2328_v53 = vrot.slane %v3736_v18, %v1151_v16  ;;  %v2745_v16 = vld [vmem:[%s3838_s6 + $0x48] sm:$0xff] }
0x13ad   :  { %3009 = vmatpush3.msra.mxu0 %v2199_v55 }
0x13ae   :  { %3140 = vpow2.f32 %v2180_v56 }
0x13b9   :  { %v3139_v36 = vpop.eup %3138 }
0x13ba   :  { %v2187_v38 = vsel %vm399_vm8, %v3139_v36, 0.0 }
0x13bb   :  { %v3141_v57 = vpop.eup %3140  ;;  %2188 = vadd.xlane.f32.xlu0 %v2187_v38  ;;  %v2744_v38 = vld [vmem:[%s3838_s6 + $0x40] sm:$0xff] }
0x13bc   :  { %v2184_v59 = vsel %vm399_vm8, %v3141_v57, 0.0 }
0x13bf   :  { %2185 = vadd.xlane.f32.xlu0 %v2184_v59 }
0x13d5   :  { %2196 = vrot.lane.b32.xlu0 %v1479_v47, %s3251_s14 }
0x1444   :  { %v2189_v60 = vpop.xlane.xlu0 %2188 }
0x1445   :  { %3142 = vrcp.f32 %v2189_v60 }
0x1448   :  { %v2186_v28 = vpop.xlane.xlu0 %2185 }
0x1449   :  { %3144 = vrcp.f32 %v2186_v28 }
0x144c   :  { %v2197_v61 = vpop.permute.xlu0 %2196 }
0x144d   :  { %3010 = vmatprep.subr.mxu0 %v2197_v61 }
0x144e   :  { %3011 = vmatpush3.msra.mxu0 %v2197_v61 }
0x144f   :  { %3015 = vmatprep.subr.mxu0 %v2741_v15 }
0x1452   :  { %v3143_v62 = vpop.eup %3142 }
0x1453   :  { %v2193_v0 = vmul.f32 %v3143_v62, %v3139_v36  ;;  %v2747_v36 = vld [vmem:[%s3838_s6 + $0x58] sm:$0xff] }
0x1454   :  { %3034 = vmatprep.subr.mxu1 %v2747_v36 }
0x1455   :  { %3035 = vmatpush3.msra.mxu1 %v2747_v36 }
0x1456   :  { %v3145_v25 = vpop.eup %3144  ;;  %3036 = vmatprep.subr.mxu1 %v2746_v58 }
0x1457   :  { %v2192_v63 = vmul.f32 %v3145_v25, %v3141_v57  ;;  %3037 = vmatpush3.msra.mxu1 %v2746_v58  ;;  %v2339_v57 = vrot.slane %v3736_v18, %v1161_v40 }
0x1458   :  { %3038 = vmatprep.subr.mxu1 %v2745_v16 }
0x1459   :  { %3012 = vmatprep.mubr.msk.f32.mxu0 %vm399_vm8, %v2192_v63  ;;  %3039 = vmatpush3.msra.mxu1 %v2745_v16  ;;  %v2435_v63 = vrot.slane %v3736_v18, %v1256_v49 }
0x145a   :  { %3013 = vmatmul.mubr.msk.f32.vlgmr.msra.gmra.mxu0 %vm399_vm8, %v2193_v0  ;;  %3040 = vmatprep.subr.mxu1 %v2744_v38 }
0x145b   :  { %3016 = vmatpush3.msra.mxu0 %v2741_v15  ;;  %3041 = vmatpush3.msra.mxu1 %v2744_v38 }
0x145c   :  { %3017 = vmatprep.subr.mxu0 %v2740_v10 }
0x145d   :  { %3018 = vmatpush3.msra.mxu0 %v2740_v10 }
0x145e   :  { %3019 = vmatprep.subr.mxu0 %v2739_v42 }
0x145f   :  { %3020 = vmatpush3.msra.mxu0 %v2739_v42 }
0x1460   :  { %3021 = vmatprep.subr.mxu0 %v2738_v23 }
0x1461   :  { %3022 = vmatpush3.msra.mxu0 %v2738_v23 }
0x151a   :  { %v3014_v1 = vpop.f32.mrf.mxu0 }
0x151b   :  { %v2284_v17 = vadd.f32 %v3014_v1, %v2080_v31 }
0x151c   :  { %v2274_v2 = vpop.f32.mrf.mxu0 }
0x151d   :  { %v2286_v34 = vadd.f32 %v2284_v17, %v3611_v35  ;;  %v2283_v26 = vadd.f32 %v2274_v2, %v2079_v39 }
0x151f   :  { %v2285_v3 = vadd.f32 %v2283_v26, %v3606_v32  ;;  %v2292_v4 = vadd.f32 %v2290_v22, %v2286_v34 }
0x1521   :  { %v2296_v5 = vsel %vm225_vm2, %v2292_v4, 0.0  ;;  %v2291_v6 = vadd.f32 %v2290_v22, %v2285_v3 }
0x1522   :  { %2297 = vadd.xlane.f32.xlu0 %v2296_v5 }
0x1523   :  { %v2293_v7 = vsel %vm225_vm2, %v2291_v6, 0.0 }
0x1524   :  { %2294 = vadd.xlane.f32.xlu1 %v2293_v7 }
0x15ab   :  { %v2298_v8 = vpop.xlane.xlu0 %2297 }
0x15ac   :  { %v2300_v43 = vmul.f32 0.03125, %v2298_v8 }
0x15ad   :  { %v2295_v9 = vpop.xlane.xlu1 %2294 }
0x15ae   :  { %v2302_v47 = vsub.f32 %v2292_v4, %v2300_v43  ;;  %v2299_v11 = vmul.f32 0.03125, %v2295_v9 }
0x15b0   :  { %v2301_v21 = vsub.f32 %v2291_v6, %v2299_v11  ;;  %v2304_v12 = vmul.f32 %v2302_v47, %v2302_v47  ;;  %v2560_v11 = vld [vmem:[%s3840_s8 + $0x18] sm:$0xff] }
0x15b1   :  { %3045 = vmatprep.subr.mxu0 %v2560_v11 }
0x15b2   :  { %v2308_v35 = vsel %vm225_vm2, %v2304_v12, 0.0  ;;  %v2303_v37 = vmul.f32 %v2301_v21, %v2301_v21  ;;  %v2558_v12 = vld [vmem:[%s3840_s8 + $0x8] sm:$0xff] }
0x15b3   :  { %2309 = vadd.xlane.f32.xlu0 %v2308_v35  ;;  %v2557_v35 = vld [vmem:[%s3840_s8] sm:$0xff] }
0x15b4   :  { %v2305_v32 = vsel %vm225_vm2, %v2303_v37, 0.0 }
0x15b5   :  { %2306 = vadd.xlane.f32.xlu1 %v2305_v32 }
0x163c   :  { %v2310_v31 = vpop.xlane.xlu0 %2309 }
0x163d   :  { %v2312_v33 = vmul.f32 0.03125, %v2310_v31 }
0x163e   :  { %v2307_v39 = vpop.xlane.xlu1 %2306 }
0x163f   :  { %v2314_v41 = vadd.f32 1e-05, %v2312_v33  ;;  %v2311_v13 = vmul.f32 0.03125, %v2307_v39  ;;  %v2554_v39 = vrot.slane %v3736_v18, %v1376_v19 }
0x1641   :  { %3146 = vrsqrt.f32 %v2314_v41  ;;  %v2313_v44 = vadd.f32 1e-05, %v2311_v13 }
0x1643   :  { %3148 = vrsqrt.f32 %v2313_v44 }
0x164e   :  { %v3147_v48 = vpop.eup %3146 }
0x164f   :  { %v2318_v51 = vmul.f32 %v3147_v48, %v2302_v47  ;;  %v2754_v48 = vld [vmem:[%s3841_s9] ss:$0 sm:$0xff] }
0x1650   :  { %v3149_v45 = vpop.eup %3148 }
0x1651   :  { %v2317_v52 = vmul.f32 %v3149_v45, %v2301_v21  ;;  %v2324_v46 = vmul.f32 %v2322_v50, %v2318_v51  ;;  %v2559_v21 = vld [vmem:[%s3840_s8 + $0x10] sm:$0xff] }
0x1653   :  { %v2323_v54 = vmul.f32 %v2322_v50, %v2317_v52  ;;  %v2330_v56 = vadd.f32 %v2328_v53, %v2324_v46 }
0x1655   :  { %v2329_v55 = vadd.f32 %v2328_v53, %v2323_v54 }
0x1657   :  { %3023 = vmatprep.mubr.msk.f32.mxu0 %vm225_vm2, %v2329_v55 }
0x1658   :  { %3024 = vmatmul.mubr.msk.f32.vlgmr.msra.gmra.mxu0 %vm225_vm2, %v2330_v56 }
0x1659   :  { %3046 = vmatpush3.msra.mxu0 %v2560_v11 }
0x165a   :  { %3047 = vmatprep.subr.mxu0 %v2559_v21 }
0x165b   :  { %3048 = vmatpush3.msra.mxu0 %v2559_v21 }
0x165c   :  { %3049 = vmatprep.subr.mxu0 %v2558_v12 }
0x165d   :  { %3050 = vmatpush3.msra.mxu0 %v2558_v12 }
0x165e   :  { %3051 = vmatprep.subr.mxu0 %v2557_v35 }
0x165f   :  { %3052 = vmatpush3.msra.mxu0 %v2557_v35 }
0x1718   :  { %v3025_v59 = vpop.f32.mrf.mxu0 }
0x1719   :  { %v2418_v60 = vadd.f32 %v3025_v59, %v2339_v57 }
0x171a   :  { %v2412_v28 = vpop.f32.mrf.mxu0 }
0x171b   :  { %v2413_v61 = vadd.f32 %v2412_v28, %v2339_v57  ;;  %v2422_v25 = vmax.f32 %v2418_v60, 0.0 }
0x171d   :  { %v2421_v62 = vmax.f32 %v2413_v61, 0.0 }
0x171f   :  { %3042 = vmatprep.mubr.msk.f32.mxu1 %vm1258_vm9, %v2421_v62 }
0x1720   :  { %3043 = vmatmul.mubr.msk.f32.vlgmr.msra.gmra.mxu1 %vm1258_vm9, %v2422_v25 }
0x17e0   :  { %v3044_v0 = vpop.f32.mrf.mxu1 }
0x17e1   :  { %v2514_v1 = vadd.f32 %v3044_v0, %v2435_v63 }
0x17e2   :  { %v2508_v17 = vpop.f32.mrf.mxu1 }
0x17e3   :  { %v2509_v22 = vadd.f32 %v2508_v17, %v2435_v63  ;;  %v2518_v2 = vadd.f32 %v2514_v1, %v2330_v56 }
0x17e5   :  { %v2522_v40 = vsel %vm225_vm2, %v2518_v2, 0.0  ;;  %v2517_v34 = vadd.f32 %v2509_v22, %v2329_v55 }
0x17e6   :  { %2523 = vadd.xlane.f32.xlu0 %v2522_v40 }
0x17e7   :  { %v2519_v26 = vsel %vm225_vm2, %v2517_v34, 0.0 }
0x17e8   :  { %2520 = vadd.xlane.f32.xlu1 %v2519_v26 }
0x186f   :  { %v2524_v3 = vpop.xlane.xlu0 %2523 }
0x1870   :  { %v2526_v4 = vmul.f32 0.03125, %v2524_v3 }
0x1871   :  { %v2521_v5 = vpop.xlane.xlu1 %2520 }
0x1872   :  { %v2528_v6 = vsub.f32 %v2518_v2, %v2526_v4  ;;  %v2525_v7 = vmul.f32 0.03125, %v2521_v5 }
0x1874   :  { %v2527_v8 = vsub.f32 %v2517_v34, %v2525_v7  ;;  %v2530_v43 = vmul.f32 %v2528_v6, %v2528_v6 }
0x1876   :  { %v2534_v49 = vsel %vm225_vm2, %v2530_v43, 0.0  ;;  %v2529_v9 = vmul.f32 %v2527_v8, %v2527_v8 }
0x1877   :  { %2535 = vadd.xlane.f32.xlu0 %v2534_v49 }
0x1878   :  { %v2531_v47 = vsel %vm225_vm2, %v2529_v9, 0.0 }
0x1879   :  { %2532 = vadd.xlane.f32.xlu1 %v2531_v47 }
0x1900   :  { %v2536_v37 = vpop.xlane.xlu0 %2535 }
0x1901   :  { %v2538_v32 = vmul.f32 0.03125, %v2536_v37 }
0x1902   :  { %v2533_v15 = vpop.xlane.xlu1 %2532 }
0x1903   :  { %v2540_v10 = vadd.f32 1e-05, %v2538_v32  ;;  %v2537_v42 = vmul.f32 0.03125, %v2533_v15 }
0x1905   :  { %3150 = vrsqrt.f32 %v2540_v10  ;;  %v2539_v23 = vadd.f32 1e-05, %v2537_v42 }
0x1907   :  { %3152 = vrsqrt.f32 %v2539_v23 }
0x1912   :  { %v3151_v24 = vpop.eup %3150 }
0x1913   :  { %v2544_v29 = vmul.f32 %v3151_v24, %v2528_v6 }
0x1914   :  { %v3153_v30 = vpop.eup %3152 }
0x1915   :  { %v2543_v31 = vmul.f32 %v3153_v30, %v2527_v8  ;;  %v2550_v33 = vmul.f32 %v2548_v27, %v2544_v29 }
0x1917   :  { %v2549_v41 = vmul.f32 %v2548_v27, %v2543_v31  ;;  %v2556_v44 = vadd.f32 %v2554_v39, %v2550_v33 }
0x1919   :  { %v2555_v13 = vadd.f32 %v2554_v39, %v2549_v41 }
0x191b   :  { %3053 = vmatprep.mubr.msk.f32.mxu0 %vm225_vm2, %v2555_v13 }
0x191c   :  { %3054 = vmatmul.mubr.msk.f32.vlgmr.msra.gmra.mxu0 %vm225_vm2, %v2556_v44 }
0x19dc   :  { %v3055_v14 = vpop.f32.mrf.mxu0 }
0x19dd   :  { %v2646_v50 = vadd.f32 %v3055_v14, %v2754_v48 }
0x19de   :  { %v2640_v51 = vpop.f32.mrf.mxu0 }
0x19df   :  { %2650 = vst.msk [vmem:[#allocation8 + $0x8] sm:$0xff] %vm399_vm8, %v2646_v50  ;;  %v2641_v20 = vadd.f32 %v2754_v48, %v2640_v51 }
0x19e1   :  { %2649 = vst.msk [vmem:[#allocation8] sm:$0xff] %vm399_vm8, %v2641_v20 }
0x19e2   :  { %3225 = shalt.err (!%p3222_p5)
}
0x19e3   :  { %2662 = dma.vmem_to_hbm [thread:$0]  %s2657_s18, 256, %s3842_s10, [#allocation4], %s3242_s22, %s3242_s22, %s3243_s23  }
0x19e4   :  { %3238 = dma.done.wait [#allocation4], 256  }
0x19e5   :  { %3239 = vsyncadd [#allocation4], 4294967040 }
0x19e6   :  { %2666 = vsyncpa [#allocation3], 1 }
0x19e7   :  { %2667 = vsyncpa [#allocation6], 1 }
0x19e8   :  { %2668 = vsyncpa [#allocation4], 1 }

</bundles_post_ra>
